<compile_context>
chip_gen: v7x
topology: tpu7x:2x2x1
jax: 0.10.0
libtpu: 0.0.40
codegen_flags: <defaults>
</compile_context>

<pallas_src>
import functools

import jax
import jax.numpy as jnp
from jax.experimental import pallas as pl
from jax.experimental.pallas import tpu as pltpu

EXPANSION = 4
BN_EPS = 1e-5
MARGIN = 8          # guard rows around the flat, halo-padded conv1-activation buffer


def _round_up(x, m):
    return ((x + m - 1) // m) * m


def _vmem_capacity_bytes():
    """Generation-aware VMEM capacity (128 MiB v5e/v6e, 64 MiB v7x); conservative fallback."""
    try:
        return int(pltpu.get_tpu_info().vmem_capacity_bytes)
    except Exception:
        return 64 * 1024 * 1024


def _pick_row_tile(h, w, n_batch, per_pixel_bytes, fixed_bytes, budget_bytes):
    """Largest row tile TH (a divisor of H) whose per-step VMEM footprint fits the budget.

    Multi-tile candidates require (TH*W) % 16 == 0 so the dynamic row slice of the bf16 input
    always starts on a packed-sublane boundary; TH == H (single tile) is always layout-safe
    because the slice degenerates to a static full read.
    """
    divisors = [d for d in range(h, 0, -1) if h % d == 0]

    def fits(d):
        return fixed_bytes + d * w * per_pixel_bytes <= budget_bytes

    cands = [d for d in divisors if fits(d) and (d == h or (d * w) % 16 == 0)]
    if cands:
        # prefer >= 2 total grid steps so megacore (v7x) has something to shard
        multi = [d for d in cands if n_batch * (h // d) >= 2]
        return (multi or cands)[0]
    aligned = [d for d in divisors if (d * w) % 16 == 0]
    return aligned[-1] if aligned else h


def _bottleneck_kernel(x_ref, w1_ref, w2_ref, w3_ref, b1_ref, b2_ref, b3_ref,
                       o_ref, bpad_ref, pat_ref=None, *, width, margin, use_im2col):
    """One (image, row-tile) grid step, fully fused in VMEM.

    x_ref    : (1, (H+2)*W, Cin_p) bf16   whole halo-padded image (resident across row tiles)
    w1_ref   : (Cin_p, Cp)   bf16         1x1 conv weight, BN1 scale folded in
    w2_ref   : (9*Cp, Cp)    bf16         3x3 conv weight as im2col matrix, BN2 scale folded in
    w3_ref   : (Cp, Cout_p)  bf16         1x1 conv weight, BN3 scale folded in
    b*_ref   : (1, Cp/Cout_p) f32         folded BN shifts
    o_ref    : (1, TH*W, Cout_p) bf16     lane-dense output tile
    bpad_ref : (2*margin + (TH+2)*W, Cp) f32  scratch: flat, halo-padded conv1 output
    pat_ref  : (TH*W, 9*Cp) bf16          scratch: im2col patches (only when use_im2col)
    """
    t_idx = pl.program_id(1)
    n_tiles = pl.num_programs(1)
    out_rows = o_ref.shape[1]                 # TH * W
    rows_in = out_rows + 2 * width            # (TH + 2) * W
    cp = w1_ref.shape[1]

    # ---- conv1 (1x1) + folded-BN bias + ReLU over the halo-extended tile rows --------------
    if rows_in == x_ref.shape[1]:             # single tile: static full read of the image
        x = x_ref[0]
    else:
        align = 16 if out_rows % 16 == 0 else 8
        start = pl.multiple_of(t_idx * out_rows, align)
        x = x_ref[0, pl.ds(start, rows_in), :]
    h1 = jnp.dot(x, w1_ref[...], preferred_element_type=jnp.float32)
    h1 = jnp.maximum(h1 + b1_ref[...], 0.0)
    bpad_ref[pl.ds(margin, rows_in), :] = h1

    # conv2's vertical 'same' padding: halo rows that fall outside the image must be zero
    # *after* conv1+BN+ReLU (the folded bias would otherwise make them nonzero).
    zrow = jnp.zeros((width, cp), jnp.float32)

    @pl.when(t_idx == 0)
    def _():
        bpad_ref[pl.ds(margin, width), :] = zrow

    @pl.when(t_idx == n_tiles - 1)
    def _():
        bpad_ref[pl.ds(margin + rows_in - width, width), :] = zrow

    # NOTE: the MARGIN guard rows of bpad_ref are intentionally never initialized.  Only two
    # guard rows are ever read (tap (-1,-1) at pixel 0 and tap (+1,+1) at the last pixel) and
    # both are always replaced by the column-edge masks below, so their contents are irrelevant.

    # column index of every output pixel, for conv2's horizontal 'same' padding
    pix = jax.lax.broadcasted_iota(jnp.int32, (out_rows, 1), 0)
    if (width & (width - 1)) == 0:
        col = jnp.bitwise_and(pix, width - 1)
    else:
        col = pix % width
    left_edge = col == 0
    right_edge = col == (width - 1)

    def taps():
        tap = 0
        for dy in (-1, 0, 1):
            for dx in (-1, 0, 1):
                off = margin + (1 + dy) * width + dx            # fully static offset
                win = bpad_ref[pl.ds(off, out_rows), :]         # (TH*W, Cp) f32
                if dx == -1:                                    # horizontal 'same' padding
                    win = jnp.where(left_edge, 0.0, win)
                elif dx == 1:
                    win = jnp.where(right_edge, 0.0, win)
                yield tap, win.astype(jnp.bfloat16)
                tap += 1

    # ---- conv2 (3x3) ------------------------------------------------------------------------
    if use_im2col:
        # wide mid channels: one deep K = 9*Cp matmul from a materialized patch buffer
        for tap, win in taps():
            pat_ref[:, tap * cp:(tap + 1) * cp] = win
        h2 = jnp.dot(pat_ref[...], w2_ref[...], preferred_element_type=jnp.float32)
    else:
        # narrow mid channels (cp == 128): nine accumulated K = Cp matmuls, no patch buffer
        h2 = None
        for tap, win in taps():
            part = jnp.dot(win, w2_ref[pl.ds(tap * cp, cp), :],
                           preferred_element_type=jnp.float32)
            h2 = part if h2 is None else h2 + part
    h2 = jnp.maximum(h2 + b2_ref[...], 0.0)

    # ---- conv3 (1x1) + bias + ReLU (downsample=None => no residual branch) ------------------
    h3 = jnp.dot(h2.astype(jnp.bfloat16), w3_ref[...], preferred_element_type=jnp.float32)
    h3 = jnp.maximum(h3 + b3_ref[...], 0.0)
    o_ref[0] = h3.astype(o_ref.dtype)


def _fold_bn(gamma, beta, mean, var):
    scale = gamma / jnp.sqrt(var + BN_EPS)
    shift = beta - mean * scale
    return scale, shift


@jax.jit
def bottleneck3conv(x_nchw, w1_oihw, w2_oihw, w3_oihw, bn1, bn2, bn3):
    """Forward pass of Bottleneck3Conv (eval-mode BN).  x_nchw: (N, Cin, H, W), NCHW."""
    N, Cin, H, W = x_nchw.shape
    C = w1_oihw.shape[0]
    Cout = w3_oihw.shape[0]
    cin_p = _round_up(Cin, 128)     # lane-dense input channels
    cp = _round_up(C, 128)          # lane-dense mid channels
    coutp = _round_up(Cout, 128)    # lane-dense output channels

    # ---- fold BN (eval mode) into per-output-channel weight scale + bias --------------------
    s1, b1 = _fold_bn(*bn1)
    s2, b2 = _fold_bn(*bn2)
    s3, b3 = _fold_bn(*bn3)
    w1 = jnp.transpose(w1_oihw[:, :, 0, 0], (1, 0)) * s1[None, :]          # (Cin, C)
    w2 = jnp.transpose(w2_oihw, (2, 3, 1, 0)) * s2[None, None, None, :]    # (3,3,C,C) HWIO
    w3 = jnp.transpose(w3_oihw[:, :, 0, 0], (1, 0)) * s3[None, :]          # (C, Cout)

    # ---- pad channels to lane-dense multiples of 128, cast MXU inputs to bf16 ---------------
    w1p = jnp.zeros((cin_p, cp), jnp.float32).at[:Cin, :C].set(w1).astype(jnp.bfloat16)
    w2p = jnp.zeros((3, 3, cp, cp), jnp.float32).at[:, :, :C, :C].set(w2)
    w2r = w2p.reshape(9 * cp, cp).astype(jnp.bfloat16)                     # im2col weight
    w3p = jnp.zeros((cp, coutp), jnp.float32).at[:C, :Cout].set(w3).astype(jnp.bfloat16)
    b1p = jnp.zeros((1, cp), jnp.float32).at[0, :C].set(b1)
    b2p = jnp.zeros((1, cp), jnp.float32).at[0, :C].set(b2)
    b3p = jnp.zeros((1, coutp), jnp.float32).at[0, :Cout].set(b3)

    # ---- input: NHWC, 1-row zero halo top/bottom, lane-dense channels, flat (rows, Cin_p) ---
    x_nhwc = jnp.transpose(x_nchw, (0, 2, 3, 1))
    x_pad = jnp.pad(x_nhwc, ((0, 0), (1, 1), (0, 0), (0, cin_p - Cin)))
    x_flat = x_pad.astype(jnp.bfloat16).reshape(N, (H + 2) * W, cin_p)

    # ---- generation-aware row tiling from a VMEM budget --------------------------------------
    use_im2col = cp >= 256
    vmem_cap = _vmem_capacity_bytes()
    per_pixel = (4 * cp                              # bpad (f32 conv1 activations)
                 + (18 * cp if use_im2col else 0)    # im2col patch buffer (bf16)
                 + 4 * cp + 4 * coutp                # h2 / h3 f32 temporaries
                 + 2 * 2 * coutp                     # double-buffered bf16 output block
                 + 2 * cp)                           # per-tap bf16 window temporary
    fixed = (2 * (H + 2) * W * cin_p * 2             # double-buffered resident input image
             + 2 * 2 * (cin_p * cp + 9 * cp * cp + cp * coutp)   # double-buffered weights
             + 2 * 4 * (2 * cp + coutp)              # double-buffered biases
             + 2 * MARGIN * cp * 4)                  # bpad guard rows
    TH = _pick_row_tile(H, W, N, per_pixel, fixed, vmem_cap // 2)
    nT = H // TH
    vmem_limit = min(max(32 * 1024 * 1024, (vmem_cap * 3) // 4), 100 * 1024 * 1024)

    flops = 2 * N * H * W * (cin_p * cp + 9 * cp * cp + cp * coutp)
    bytes_accessed = (N * (H + 2) * W * cin_p * 2
                      + (cin_p * cp + 9 * cp * cp + cp * coutp) * 2
                      + (2 * cp + coutp) * 4
                      + N * H * W * coutp * 2)

    kernel = functools.partial(_bottleneck_kernel, width=W, margin=MARGIN,
                               use_im2col=use_im2col)

    scratch_shapes = [pltpu.VMEM((2 * MARGIN + (TH + 2) * W, cp), jnp.float32)]
    if use_im2col:
        scratch_shapes.append(pltpu.VMEM((TH * W, 9 * cp), jnp.bfloat16))

    out = pl.pallas_call(
        kernel,
        out_shape=jax.ShapeDtypeStruct((N, H * W, coutp), jnp.bfloat16),
        grid_spec=pltpu.PrefetchScalarGridSpec(
            num_scalar_prefetch=0,
            grid=(N, nT),
            in_specs=[
                # Whole padded image per batch element: the index map does not depend on t, so
                # the HBM->VMEM copy happens once per image and is reused by every row tile.
                pl.BlockSpec((1, (H + 2) * W, cin_p), lambda n, t: (n, 0, 0)),
                pl.BlockSpec((cin_p, cp), lambda n, t: (0, 0)),
                pl.BlockSpec((9 * cp, cp), lambda n, t: (0, 0)),
                pl.BlockSpec((cp, coutp), lambda n, t: (0, 0)),
                pl.BlockSpec((1, cp), lambda n, t: (0, 0)),
                pl.BlockSpec((1, cp), lambda n, t: (0, 0)),
                pl.BlockSpec((1, coutp), lambda n, t: (0, 0)),
            ],
            out_specs=pl.BlockSpec((1, TH * W, coutp), lambda n, t: (n, t, 0)),
            scratch_shapes=scratch_shapes,
        ),
        compiler_params=pltpu.CompilerParams(
            # No carried state across row tiles (halo recomputed per tile, disjoint outputs),
            # so both grid axes are parallel -> v7x megacore shards over (image, tile).
            dimension_semantics=("parallel", "parallel"),
            vmem_limit_bytes=int(vmem_limit),
        ),
        cost_estimate=pl.CostEstimate(flops=flops, transcendentals=0,
                                      bytes_accessed=bytes_accessed),
    )(x_flat, w1p, w2r, w3p, b1p, b2p, b3p)

    out = out[:, :, :Cout].reshape(N, H, W, Cout)
    return jnp.transpose(out, (0, 3, 1, 2)).astype(x_nchw.dtype)      # back to NCHW


# --------------------------- pure-JAX reference (for verification) ---------------------------
def _ref_forward(x_nchw, w1_oihw, w2_oihw, w3_oihw, bn1, bn2, bn3):
    def conv(x_nhwc, w_oihw, padding):
        w = jnp.transpose(w_oihw, (2, 3, 1, 0))  # HWIO
        return jax.lax.conv_general_dilated(
            x_nhwc, w, window_strides=(1, 1), padding=padding,
            dimension_numbers=("NHWC", "HWIO", "NHWC"))

    def bn(x, params):
        gamma, beta, mean, var = params
        return (x - mean) / jnp.sqrt(var + BN_EPS) * gamma + beta

    x = jnp.transpose(x_nchw, (0, 2, 3, 1))
    h = jax.nn.relu(bn(conv(x, w1_oihw, "VALID"), bn1))
    h = jax.nn.relu(bn(conv(h, w2_oihw, [(1, 1), (1, 1)]), bn2))
    h = jax.nn.relu(bn(conv(h, w3_oihw, "VALID"), bn3))
    return jnp.transpose(h, (0, 3, 1, 2))


if __name__ == "__main__":
    key = jax.random.PRNGKey(0)
    N, Cin, H, W = 2, 4, 16, 16
    C = 4                       # out_channels
    Cout = C * EXPANSION        # 16

    ks = jax.random.split(key, 8)
    x = jax.random.normal(ks[0], (N, Cin, H, W), jnp.float32)

    # conv weights in PyTorch OIHW layout, deterministic init
    w1 = jax.random.normal(ks[1], (C, Cin, 1, 1), jnp.float32) * 0.2
    w2 = jax.random.normal(ks[2], (C, C, 3, 3), jnp.float32) * 0.2
    w3 = jax.random.normal(ks[3], (Cout, C, 1, 1), jnp.float32) * 0.2

    def bn_params(k, ch):
        kg, kb, km, kv = jax.random.split(k, 4)
        gamma = 1.0 + 0.1 * jax.random.normal(kg, (ch,), jnp.float32)
        beta = 0.1 * jax.random.normal(kb, (ch,), jnp.float32)
        mean = 0.1 * jax.random.normal(km, (ch,), jnp.float32)
        var = jax.random.uniform(kv, (ch,), jnp.float32, 0.5, 1.5)
        return gamma, beta, mean, var

    bn1 = bn_params(ks[4], C)
    bn2 = bn_params(ks[5], C)
    bn3 = bn_params(ks[6], Cout)

    out = jax.block_until_ready(bottleneck3conv(x, w1, w2, w3, bn1, bn2, bn3))
    ref = jax.block_until_ready(_ref_forward(x, w1, w2, w3, bn1, bn2, bn3))

    assert out.shape == (N, Cout, H, W)
    # kernel runs the matmuls with bf16 inputs (f32 accumulation) and writes bf16 output
    assert jnp.allclose(out, ref, atol=5e-2, rtol=5e-2), "mismatch vs JAX reference"

    print("KERNEL_OK")
</pallas_src>

<mosaic_0001>
module attributes {stable_mosaic.version = 11 : i64} {
  func.func @_bottleneck_kernel(%arg0: i32, %arg1: i32, %arg2: memref<1x288x128xbf16, #tpu.memory_space<vmem>>, %arg3: memref<128x128xbf16, #tpu.memory_space<vmem>>, %arg4: memref<1152x128xbf16, #tpu.memory_space<vmem>>, %arg5: memref<128x128xbf16, #tpu.memory_space<vmem>>, %arg6: memref<1x128xf32, #tpu.memory_space<vmem>>, %arg7: memref<1x128xf32, #tpu.memory_space<vmem>>, %arg8: memref<1x128xf32, #tpu.memory_space<vmem>>, %arg9: memref<1x256x128xbf16, #tpu.memory_space<vmem>>, %arg10: memref<304x128xf32, #tpu.memory_space<vmem>>) attributes {dimension_semantics = [#tpu.dimension_semantics<parallel>, #tpu.dimension_semantics<parallel>], iteration_bounds = array<i64: 2, 1>, scalar_prefetch = 0 : i64, scratch_operands = 1 : i64, tpu.core_type = #tpu.core_type<tc>, window_params = [{transform_indices = @transform_0, window_bounds = array<i64: 1, 288, 128>}, {pipeline_mode = #tpu.pipeline_mode<synchronous>, transform_indices = @transform_1, window_bounds = array<i64: 128, 128>}, {pipeline_mode = #tpu.pipeline_mode<synchronous>, transform_indices = @transform_2, window_bounds = array<i64: 1152, 128>}, {pipeline_mode = #tpu.pipeline_mode<synchronous>, transform_indices = @transform_3, window_bounds = array<i64: 128, 128>}, {pipeline_mode = #tpu.pipeline_mode<synchronous>, transform_indices = @transform_4, window_bounds = array<i64: 1, 128>}, {pipeline_mode = #tpu.pipeline_mode<synchronous>, transform_indices = @transform_5, window_bounds = array<i64: 1, 128>}, {pipeline_mode = #tpu.pipeline_mode<synchronous>, transform_indices = @transform_6, window_bounds = array<i64: 1, 128>}, {transform_indices = @transform_7, window_bounds = array<i64: 1, 256, 128>}]} {
    %c0 = arith.constant 0 : index
    %c0_0 = arith.constant 0 : index
    %c0_1 = arith.constant 0 : index
    %0 = vector.load %arg2[%c0, %c0_0, %c0_1] : memref<1x288x128xbf16, #tpu.memory_space<vmem>>, vector<1x288x128xbf16>
    %1 = vector.shape_cast %0 : vector<1x288x128xbf16> to vector<288x128xbf16>
    %c0_2 = arith.constant 0 : index
    %c0_3 = arith.constant 0 : index
    %2 = vector.load %arg3[%c0_2, %c0_3] : memref<128x128xbf16, #tpu.memory_space<vmem>>, vector<128x128xbf16>
    %cst = arith.constant dense<0.000000e+00> : vector<288x128xf32>
    %3 = tpu.matmul %1, %2, %cst {dimension_numbers = #tpu.dot_dimension_numbers<[1], [0], [0], [1], [0, 0, 1, 1], [], []>} : vector<288x128xbf16>, vector<128x128xbf16>, vector<288x128xf32> -> vector<288x128xf32>
    %c0_4 = arith.constant 0 : index
    %c0_5 = arith.constant 0 : index
    %4 = vector.load %arg6[%c0_4, %c0_5] : memref<1x128xf32, #tpu.memory_space<vmem>>, vector<1x128xf32>
    %5 = vector.broadcast %4 : vector<1x128xf32> to vector<288x128xf32>
    %6 = arith.addf %3, %5 : vector<288x128xf32>
    %cst_6 = arith.constant 0.000000e+00 : f32
    %7 = vector.broadcast %cst_6 : f32 to vector<288x128xf32>
    %8 = arith.maximumf %6, %7 : vector<288x128xf32>
    %c8 = arith.constant 8 : index
    %c0_7 = arith.constant 0 : index
    %9 = vector.load %arg10[%c8, %c0_7] : memref<304x128xf32, #tpu.memory_space<vmem>>, vector<288x128xf32>
    tpu.vector_store %arg10[%c8, %c0_7], %8 {strides = array<i32>} : memref<304x128xf32, #tpu.memory_space<vmem>>, vector<288x128xf32>,
    %cst_8 = arith.constant 0.000000e+00 : f32
    %10 = vector.broadcast %cst_8 : f32 to vector<16x128xf32>
    %c0_i32 = arith.constant 0 : i32
    %11 = arith.cmpi eq, %arg1, %c0_i32 : i32
    %12 = arith.extui %11 : i1 to i32
    %c0_i32_9 = arith.constant 0 : i32
    %13 = arith.cmpi ne, %12, %c0_i32_9 : i32
    scf.if %13 {
      %c8_61 = arith.constant 8 : index
      %c0_62 = arith.constant 0 : index
      %109 = vector.load %arg10[%c8_61, %c0_62] : memref<304x128xf32, #tpu.memory_space<vmem>>, vector<16x128xf32>
      tpu.vector_store %arg10[%c8_61, %c0_62], %10 {strides = array<i32>} : memref<304x128xf32, #tpu.memory_space<vmem>>, vector<16x128xf32>,
    } else {
    }
    %c0_i32_10 = arith.constant 0 : i32
    %14 = arith.cmpi eq, %arg1, %c0_i32_10 : i32
    %15 = arith.extui %14 : i1 to i32
    %c0_i32_11 = arith.constant 0 : i32
    %16 = arith.cmpi ne, %15, %c0_i32_11 : i32
    scf.if %16 {
      %c280 = arith.constant 280 : index
      %c0_61 = arith.constant 0 : index
      %109 = vector.load %arg10[%c280, %c0_61] : memref<304x128xf32, #tpu.memory_space<vmem>>, vector<16x128xf32>
      tpu.vector_store %arg10[%c280, %c0_61], %10 {strides = array<i32>} : memref<304x128xf32, #tpu.memory_space<vmem>>, vector<16x128xf32>,
    } else {
    }
    %17 = tpu.iota {dimensions = array<i32: 0>} : vector<256x1xi32>
    %c15_i32 = arith.constant 15 : i32
    %18 = vector.broadcast %c15_i32 : i32 to vector<256x1xi32>
    %19 = arith.andi %17, %18 : vector<256x1xi32>
    %c0_i32_12 = arith.constant 0 : i32
    %20 = vector.broadcast %c0_i32_12 : i32 to vector<256x1xi32>
    %21 = arith.cmpi eq, %19, %20 : vector<256x1xi32>
    %c15_i32_13 = arith.constant 15 : i32
    %22 = vector.broadcast %c15_i32_13 : i32 to vector<256x1xi32>
    %23 = arith.cmpi eq, %19, %22 : vector<256x1xi32>
    %c7 = arith.constant 7 : index
    %c0_14 = arith.constant 0 : index
    %24 = vector.load %arg10[%c7, %c0_14] : memref<304x128xf32, #tpu.memory_space<vmem>>, vector<256x128xf32>
    %cst_15 = arith.constant 0.000000e+00 : f32
    %25 = vector.shape_cast %21 : vector<256x1xi1> to vector<256x1xi1>
    %26 = vector.broadcast %25 : vector<256x1xi1> to vector<256x128xi1>
    %27 = vector.broadcast %cst_15 : f32 to vector<256x128xf32>
    %28 = arith.select %26, %27, %24 : vector<256x128xi1>, vector<256x128xf32>
    %29 = arith.truncf %28 : vector<256x128xf32> to vector<256x128xbf16>
    %c0_16 = arith.constant 0 : index
    %c0_17 = arith.constant 0 : index
    %30 = vector.load %arg4[%c0_16, %c0_17] : memref<1152x128xbf16, #tpu.memory_space<vmem>>, vector<128x128xbf16>
    %cst_18 = arith.constant dense<0.000000e+00> : vector<256x128xf32>
    %31 = tpu.matmul %29, %30, %cst_18 {dimension_numbers = #tpu.dot_dimension_numbers<[1], [0], [0], [1], [0, 0, 1, 1], [], []>} : vector<256x128xbf16>, vector<128x128xbf16>, vector<256x128xf32> -> vector<256x128xf32>
    %c8_19 = arith.constant 8 : index
    %c0_20 = arith.constant 0 : index
    %32 = vector.load %arg10[%c8_19, %c0_20] : memref<304x128xf32, #tpu.memory_space<vmem>>, vector<256x128xf32>
    %33 = arith.truncf %32 : vector<256x128xf32> to vector<256x128xbf16>
    %c128 = arith.constant 128 : index
    %c0_21 = arith.constant 0 : index
    %34 = vector.load %arg4[%c128, %c0_21] : memref<1152x128xbf16, #tpu.memory_space<vmem>>, vector<128x128xbf16>
    %cst_22 = arith.constant dense<0.000000e+00> : vector<256x128xf32>
    %35 = tpu.matmul %33, %34, %cst_22 {dimension_numbers = #tpu.dot_dimension_numbers<[1], [0], [0], [1], [0, 0, 1, 1], [], []>} : vector<256x128xbf16>, vector<128x128xbf16>, vector<256x128xf32> -> vector<256x128xf32>
    %36 = arith.addf %31, %35 : vector<256x128xf32>
    %c9 = arith.constant 9 : index
    %c0_23 = arith.constant 0 : index
    %37 = vector.load %arg10[%c9, %c0_23] : memref<304x128xf32, #tpu.memory_space<vmem>>, vector<256x128xf32>
    %cst_24 = arith.constant 0.000000e+00 : f32
    %38 = vector.shape_cast %23 : vector<256x1xi1> to vector<256x1xi1>
    %39 = vector.broadcast %38 : vector<256x1xi1> to vector<256x128xi1>
    %40 = vector.broadcast %cst_24 : f32 to vector<256x128xf32>
    %41 = arith.select %39, %40, %37 : vector<256x128xi1>, vector<256x128xf32>
    %42 = arith.truncf %41 : vector<256x128xf32> to vector<256x128xbf16>
    %c256 = arith.constant 256 : index
    %c0_25 = arith.constant 0 : index
    %43 = vector.load %arg4[%c256, %c0_25] : memref<1152x128xbf16, #tpu.memory_space<vmem>>, vector<128x128xbf16>
    %cst_26 = arith.constant dense<0.000000e+00> : vector<256x128xf32>
    %44 = tpu.matmul %42, %43, %cst_26 {dimension_numbers = #tpu.dot_dimension_numbers<[1], [0], [0], [1], [0, 0, 1, 1], [], []>} : vector<256x128xbf16>, vector<128x128xbf16>, vector<256x128xf32> -> vector<256x128xf32>
    %45 = arith.addf %36, %44 : vector<256x128xf32>
    %c23 = arith.constant 23 : index
    %c0_27 = arith.constant 0 : index
    %46 = vector.load %arg10[%c23, %c0_27] : memref<304x128xf32, #tpu.memory_space<vmem>>, vector<256x128xf32>
    %cst_28 = arith.constant 0.000000e+00 : f32
    %47 = vector.shape_cast %21 : vector<256x1xi1> to vector<256x1xi1>
    %48 = vector.broadcast %47 : vector<256x1xi1> to vector<256x128xi1>
    %49 = vector.broadcast %cst_28 : f32 to vector<256x128xf32>
    %50 = arith.select %48, %49, %46 : vector<256x128xi1>, vector<256x128xf32>
    %51 = arith.truncf %50 : vector<256x128xf32> to vector<256x128xbf16>
    %c384 = arith.constant 384 : index
    %c0_29 = arith.constant 0 : index
    %52 = vector.load %arg4[%c384, %c0_29] : memref<1152x128xbf16, #tpu.memory_space<vmem>>, vector<128x128xbf16>
    %cst_30 = arith.constant dense<0.000000e+00> : vector<256x128xf32>
    %53 = tpu.matmul %51, %52, %cst_30 {dimension_numbers = #tpu.dot_dimension_numbers<[1], [0], [0], [1], [0, 0, 1, 1], [], []>} : vector<256x128xbf16>, vector<128x128xbf16>, vector<256x128xf32> -> vector<256x128xf32>
    %54 = arith.addf %45, %53 : vector<256x128xf32>
    %c24 = arith.constant 24 : index
    %c0_31 = arith.constant 0 : index
    %55 = vector.load %arg10[%c24, %c0_31] : memref<304x128xf32, #tpu.memory_space<vmem>>, vector<256x128xf32>
    %56 = arith.truncf %55 : vector<256x128xf32> to vector<256x128xbf16>
    %c512 = arith.constant 512 : index
    %c0_32 = arith.constant 0 : index
    %57 = vector.load %arg4[%c512, %c0_32] : memref<1152x128xbf16, #tpu.memory_space<vmem>>, vector<128x128xbf16>
    %cst_33 = arith.constant dense<0.000000e+00> : vector<256x128xf32>
    %58 = tpu.matmul %56, %57, %cst_33 {dimension_numbers = #tpu.dot_dimension_numbers<[1], [0], [0], [1], [0, 0, 1, 1], [], []>} : vector<256x128xbf16>, vector<128x128xbf16>, vector<256x128xf32> -> vector<256x128xf32>
    %59 = arith.addf %54, %58 : vector<256x128xf32>
    %c25 = arith.constant 25 : index
    %c0_34 = arith.constant 0 : index
    %60 = vector.load %arg10[%c25, %c0_34] : memref<304x128xf32, #tpu.memory_space<vmem>>, vector<256x128xf32>
    %cst_35 = arith.constant 0.000000e+00 : f32
    %61 = vector.shape_cast %23 : vector<256x1xi1> to vector<256x1xi1>
    %62 = vector.broadcast %61 : vector<256x1xi1> to vector<256x128xi1>
    %63 = vector.broadcast %cst_35 : f32 to vector<256x128xf32>
    %64 = arith.select %62, %63, %60 : vector<256x128xi1>, vector<256x128xf32>
    %65 = arith.truncf %64 : vector<256x128xf32> to vector<256x128xbf16>
    %c640 = arith.constant 640 : index
    %c0_36 = arith.constant 0 : index
    %66 = vector.load %arg4[%c640, %c0_36] : memref<1152x128xbf16, #tpu.memory_space<vmem>>, vector<128x128xbf16>
    %cst_37 = arith.constant dense<0.000000e+00> : vector<256x128xf32>
    %67 = tpu.matmul %65, %66, %cst_37 {dimension_numbers = #tpu.dot_dimension_numbers<[1], [0], [0], [1], [0, 0, 1, 1], [], []>} : vector<256x128xbf16>, vector<128x128xbf16>, vector<256x128xf32> -> vector<256x128xf32>
    %68 = arith.addf %59, %67 : vector<256x128xf32>
    %c39 = arith.constant 39 : index
    %c0_38 = arith.constant 0 : index
    %69 = vector.load %arg10[%c39, %c0_38] : memref<304x128xf32, #tpu.memory_space<vmem>>, vector<256x128xf32>
    %cst_39 = arith.constant 0.000000e+00 : f32
    %70 = vector.shape_cast %21 : vector<256x1xi1> to vector<256x1xi1>
    %71 = vector.broadcast %70 : vector<256x1xi1> to vector<256x128xi1>
    %72 = vector.broadcast %cst_39 : f32 to vector<256x128xf32>
    %73 = arith.select %71, %72, %69 : vector<256x128xi1>, vector<256x128xf32>
    %74 = arith.truncf %73 : vector<256x128xf32> to vector<256x128xbf16>
    %c768 = arith.constant 768 : index
    %c0_40 = arith.constant 0 : index
    %75 = vector.load %arg4[%c768, %c0_40] : memref<1152x128xbf16, #tpu.memory_space<vmem>>, vector<128x128xbf16>
    %cst_41 = arith.constant dense<0.000000e+00> : vector<256x128xf32>
    %76 = tpu.matmul %74, %75, %cst_41 {dimension_numbers = #tpu.dot_dimension_numbers<[1], [0], [0], [1], [0, 0, 1, 1], [], []>} : vector<256x128xbf16>, vector<128x128xbf16>, vector<256x128xf32> -> vector<256x128xf32>
    %77 = arith.addf %68, %76 : vector<256x128xf32>
    %c40 = arith.constant 40 : index
    %c0_42 = arith.constant 0 : index
    %78 = vector.load %arg10[%c40, %c0_42] : memref<304x128xf32, #tpu.memory_space<vmem>>, vector<256x128xf32>
    %79 = arith.truncf %78 : vector<256x128xf32> to vector<256x128xbf16>
    %c896 = arith.constant 896 : index
    %c0_43 = arith.constant 0 : index
    %80 = vector.load %arg4[%c896, %c0_43] : memref<1152x128xbf16, #tpu.memory_space<vmem>>, vector<128x128xbf16>
    %cst_44 = arith.constant dense<0.000000e+00> : vector<256x128xf32>
    %81 = tpu.matmul %79, %80, %cst_44 {dimension_numbers = #tpu.dot_dimension_numbers<[1], [0], [0], [1], [0, 0, 1, 1], [], []>} : vector<256x128xbf16>, vector<128x128xbf16>, vector<256x128xf32> -> vector<256x128xf32>
    %82 = arith.addf %77, %81 : vector<256x128xf32>
    %c41 = arith.constant 41 : index
    %c0_45 = arith.constant 0 : index
    %83 = vector.load %arg10[%c41, %c0_45] : memref<304x128xf32, #tpu.memory_space<vmem>>, vector<256x128xf32>
    %cst_46 = arith.constant 0.000000e+00 : f32
    %84 = vector.shape_cast %23 : vector<256x1xi1> to vector<256x1xi1>
    %85 = vector.broadcast %84 : vector<256x1xi1> to vector<256x128xi1>
    %86 = vector.broadcast %cst_46 : f32 to vector<256x128xf32>
    %87 = arith.select %85, %86, %83 : vector<256x128xi1>, vector<256x128xf32>
    %88 = arith.truncf %87 : vector<256x128xf32> to vector<256x128xbf16>
    %c1024 = arith.constant 1024 : index
    %c0_47 = arith.constant 0 : index
    %89 = vector.load %arg4[%c1024, %c0_47] : memref<1152x128xbf16, #tpu.memory_space<vmem>>, vector<128x128xbf16>
    %cst_48 = arith.constant dense<0.000000e+00> : vector<256x128xf32>
    %90 = tpu.matmul %88, %89, %cst_48 {dimension_numbers = #tpu.dot_dimension_numbers<[1], [0], [0], [1], [0, 0, 1, 1], [], []>} : vector<256x128xbf16>, vector<128x128xbf16>, vector<256x128xf32> -> vector<256x128xf32>
    %91 = arith.addf %82, %90 : vector<256x128xf32>
    %c0_49 = arith.constant 0 : index
    %c0_50 = arith.constant 0 : index
    %92 = vector.load %arg7[%c0_49, %c0_50] : memref<1x128xf32, #tpu.memory_space<vmem>>, vector<1x128xf32>
    %93 = vector.broadcast %92 : vector<1x128xf32> to vector<256x128xf32>
    %94 = arith.addf %91, %93 : vector<256x128xf32>
    %cst_51 = arith.constant 0.000000e+00 : f32
    %95 = vector.broadcast %cst_51 : f32 to vector<256x128xf32>
    %96 = arith.maximumf %94, %95 : vector<256x128xf32>
    %97 = arith.truncf %96 : vector<256x128xf32> to vector<256x128xbf16>
    %c0_52 = arith.constant 0 : index
    %c0_53 = arith.constant 0 : index
    %98 = vector.load %arg5[%c0_52, %c0_53] : memref<128x128xbf16, #tpu.memory_space<vmem>>, vector<128x128xbf16>
    %cst_54 = arith.constant dense<0.000000e+00> : vector<256x128xf32>
    %99 = tpu.matmul %97, %98, %cst_54 {dimension_numbers = #tpu.dot_dimension_numbers<[1], [0], [0], [1], [0, 0, 1, 1], [], []>} : vector<256x128xbf16>, vector<128x128xbf16>, vector<256x128xf32> -> vector<256x128xf32>
    %c0_55 = arith.constant 0 : index
    %c0_56 = arith.constant 0 : index
    %100 = vector.load %arg8[%c0_55, %c0_56] : memref<1x128xf32, #tpu.memory_space<vmem>>, vector<1x128xf32>
    %101 = vector.broadcast %100 : vector<1x128xf32> to vector<256x128xf32>
    %102 = arith.addf %99, %101 : vector<256x128xf32>
    %cst_57 = arith.constant 0.000000e+00 : f32
    %103 = vector.broadcast %cst_57 : f32 to vector<256x128xf32>
    %104 = arith.maximumf %102, %103 : vector<256x128xf32>
    %105 = arith.truncf %104 : vector<256x128xf32> to vector<256x128xbf16>
    %c0_58 = arith.constant 0 : index
    %c0_59 = arith.constant 0 : index
    %c0_60 = arith.constant 0 : index
    %106 = vector.load %arg9[%c0_58, %c0_59, %c0_60] : memref<1x256x128xbf16, #tpu.memory_space<vmem>>, vector<1x256x128xbf16>
    %107 = vector.shape_cast %106 : vector<1x256x128xbf16> to vector<256x128xbf16>
    %108 = vector.shape_cast %105 : vector<256x128xbf16> to vector<1x256x128xbf16>
    tpu.vector_store %arg9[%c0_58, %c0_59, %c0_60], %108 {strides = array<i32>} : memref<1x256x128xbf16, #tpu.memory_space<vmem>>, vector<1x256x128xbf16>,
    return
  }
  func.func @transform_0(%arg0: i32, %arg1: i32) -> (i32, i32, i32) {
    %c0_i32 = arith.constant 0 : i32
    %c0_i32_0 = arith.constant 0 : i32
    %c0_i32_1 = arith.constant 0 : i32
    return %arg0, %c0_i32, %c0_i32_0 : i32, i32, i32
  }
  func.func @transform_1(%arg0: i32, %arg1: i32) -> (i32, i32) {
    %c0_i32 = arith.constant 0 : i32
    %c0_i32_0 = arith.constant 0 : i32
    %c0_i32_1 = arith.constant 0 : i32
    return %c0_i32, %c0_i32_0 : i32, i32
  }
  func.func @transform_2(%arg0: i32, %arg1: i32) -> (i32, i32) {
    %c0_i32 = arith.constant 0 : i32
    %c0_i32_0 = arith.constant 0 : i32
    %c0_i32_1 = arith.constant 0 : i32
    return %c0_i32, %c0_i32_0 : i32, i32
  }
  func.func @transform_3(%arg0: i32, %arg1: i32) -> (i32, i32) {
    %c0_i32 = arith.constant 0 : i32
    %c0_i32_0 = arith.constant 0 : i32
    %c0_i32_1 = arith.constant 0 : i32
    return %c0_i32, %c0_i32_0 : i32, i32
  }
  func.func @transform_4(%arg0: i32, %arg1: i32) -> (i32, i32) {
    %c0_i32 = arith.constant 0 : i32
    %c0_i32_0 = arith.constant 0 : i32
    %c0_i32_1 = arith.constant 0 : i32
    return %c0_i32, %c0_i32_0 : i32, i32
  }
  func.func @transform_5(%arg0: i32, %arg1: i32) -> (i32, i32) {
    %c0_i32 = arith.constant 0 : i32
    %c0_i32_0 = arith.constant 0 : i32
    %c0_i32_1 = arith.constant 0 : i32
    return %c0_i32, %c0_i32_0 : i32, i32
  }
  func.func @transform_6(%arg0: i32, %arg1: i32) -> (i32, i32) {
    %c0_i32 = arith.constant 0 : i32
    %c0_i32_0 = arith.constant 0 : i32
    %c0_i32_1 = arith.constant 0 : i32
    return %c0_i32, %c0_i32_0 : i32, i32
  }
  func.func @transform_7(%arg0: i32, %arg1: i32) -> (i32, i32, i32) {
    %c0_i32 = arith.constant 0 : i32
    %c0_i32_0 = arith.constant 0 : i32
    return %arg0, %arg1, %c0_i32 : i32, i32, i32
  }
}

</mosaic_0001>

<bundles_post_ra>
// kernel: bottleneck3conv.1
= control target key start
LH: loop header
LB: loop body
LE: loop exit
PB: predicated region body
PF: predicated region fallthrough
CT: control target
= control target key end

     0   :  { %s6466_s24 = smov 0   ;;  %s6468_s25 = smov 0   ;;  %s7664_s0 = inlined_call_operand.vmem [shape: bf16[2,288,128], index: 0, kind: input, shape index: {}]   ;;  %s7665_s1 = inlined_call_operand.vmem [shape: bf16[128,128], index: 1, kind: input, shape index: {}]   ;;  %s7666_s2 = inlined_call_operand.vmem [shape: bf16[1152,128], index: 2, kind: input, shape index: {}]   ;;  %s7667_s3 = inlined_call_operand.vmem [shape: bf16[128,128], index: 3, kind: input, shape index: {}]   ;;  %s7668_s4 = inlined_call_operand.vmem [shape: f32[1,128], index: 4, kind: input, shape index: {}]   ;;  %s7669_s5 = inlined_call_operand.vmem [shape: f32[1,128], index: 5, kind: input, shape index: {}]   ;;  %s7670_s6 = inlined_call_operand.vmem [shape: f32[1,128], index: 6, kind: input, shape index: {}]   ;;  %s7671_s7 = inlined_call_operand.vmem [shape: bf16[2,256,128], index: 7, kind: output, shape index: {}]  }
   0x1   :  { %s6470_s26 = smov 0  }
   0x2 LB: > { %s29_s27 = sadd.s32 1, %s6417_s25  ;;  %p4501_p0 = scmp.ge.s32.totalorder %s6421_s26, 1  ;;  %s6421_s26 = sphi %s6470_s26, %s17_s26   ;;  %s6417_s25 = sphi %s6468_s25, %s7789_s25   ;;  %s6413_s24 = sphi %s6466_s24, %s7788_s24  }
   0x3   : > { %p31_p1 = scmp.ge.s32.totalorder %s29_s27, 2  ;;  %p251_p2 = scmp.lt.s32.totalorder %s6421_s26, 3 }
   0x5   : > { %s7791_s27 = smov (%p31_p1, %s29_s27), 0  ;;  %p252_p3 = pnand %p4501_p0, %p251_p2 }
   0x6   : > { %v6289_v0 = vld [vmem:[%s7665_s1] sm:$0xff] (!%p252_p3)   ;;  %p287_p4 = scmp.lt.s32.totalorder (!%p252_p3), %s6413_s24, 1  ;;  %v6290_v1 = vld [vmem:[%s7665_s1 + $0x8] sm:$0xff] (!%p252_p3)   ;;  %v6291_v2 = vld [vmem:[%s7665_s1 + $0x10] sm:$0xff] (!%p252_p3)   ;;  %v6423_v34 = vmov (!%p252_p3), 0.0   ;;  %v6424_v35 = vmov (!%p252_p3), 0.0|0.0  }
   0x7   : > { %255 = sbr.rel (%p252_p3) target bundleno = 1098 (0x44a), region = 48  ;;  %5458 = vmatprep.subr.bf16.mxu0 (!%p252_p3), %v6289_v0  ;;  %v6292_v3 = vld [vmem:[%s7665_s1 + $0x18] sm:$0xff] (!%p252_p3)   ;;  %v6293_v5 = vld [vmem:[%s7665_s1 + $0x20] sm:$0xff] (!%p252_p3)   ;;  %v6294_v6 = vld [vmem:[%s7665_s1 + $0x28] sm:$0xff] (!%p252_p3)   ;;  %771 = vst [vmem:[#allocation2 + $0x8] sm:$0xff] (!%p252_p3), %v6423_v34  ;;  %vm6425_vm1 = vmmov (!%p252_p3), 1  }
   0x8   : > { %5459 = vmatpush3.bf16.msra.mxu0 (!%p252_p3), %v6289_v0  ;;  %v6295_v7 = vld [vmem:[%s7665_s1 + $0x30] sm:$0xff] (!%p252_p3)   ;;  %v6296_v8 = vld [vmem:[%s7665_s1 + $0x38] sm:$0xff] (!%p252_p3)   ;;  %v6315_v10 = vld [vmem:[%s7666_s2 + $0x40] sm:$0xff] (!%p252_p3)   ;;  %772 = vst [vmem:[#allocation2 + $0x10] sm:$0xff] (!%p252_p3), %v6423_v34 }
   0x9   : > { %5460 = vmatprep.subr.bf16.mxu0 (!%p252_p3), %v6290_v1  ;;  %v6316_v12 = vld [vmem:[%s7666_s2 + $0x48] sm:$0xff] (!%p252_p3)   ;;  %v6317_v13 = vld [vmem:[%s7666_s2 + $0x50] sm:$0xff] (!%p252_p3)   ;;  %v6318_v29 = vld [vmem:[%s7666_s2 + $0x58] sm:$0xff] (!%p252_p3)   ;;  %773 = vst [vmem:[#allocation2 + $0x118] sm:$0xff] (!%p252_p3), %v6423_v34 }
   0xa   : > { %v6319_v30 = vld [vmem:[%s7666_s2 + $0x60] sm:$0xff] (!%p252_p3)   ;;  %v6320_v31 = vld [vmem:[%s7666_s2 + $0x68] sm:$0xff] (!%p252_p3)   ;;  %v6321_v32 = vld [vmem:[%s7666_s2 + $0x70] sm:$0xff] (!%p252_p3)   ;;  %774 = vst [vmem:[#allocation2 + $0x120] sm:$0xff] (!%p252_p3), %v6423_v34 }
   0xb   : > { %v6322_v33 = vld [vmem:[%s7666_s2 + $0x78] sm:$0xff] (!%p252_p3)   ;;  %v6561_v36 = vld [vmem:[%s7666_s2 + $0xc0] sm:$0xff] (!%p252_p3)   ;;  %v6568_v37 = vld [vmem:[%s7666_s2 + $0xc8] sm:$0xff] (!%p252_p3)  }
   0xc   : > { %5461 = vmatpush3.bf16.msra.mxu0 (!%p252_p3), %v6290_v1  ;;  %5990 = vmatprep.subr.bf16.mxu1 (!%p252_p3), %v6561_v36  ;;  %v6575_v38 = vld [vmem:[%s7666_s2 + $0xd0] sm:$0xff] (!%p252_p3)   ;;  %v6582_v39 = vld [vmem:[%s7666_s2 + $0xd8] sm:$0xff] (!%p252_p3)   ;;  %v6589_v40 = vld [vmem:[%s7666_s2 + $0xe0] sm:$0xff] (!%p252_p3)  }
   0xd   : > { %5462 = vmatprep.subr.bf16.mxu0 (!%p252_p3), %v6291_v2  ;;  %5998 = vmatpush3.bf16.msra.mxu1 (!%p252_p3), %v6561_v36  ;;  %v6330_v41 = vld [vmem:[%s7666_s2] sm:$0xff] (!%p252_p3)   ;;  %v6599_v42 = vld [vmem:[%s7666_s2 + $0xe8] sm:$0xff] (!%p252_p3)   ;;  %v6329_v43 = vld [vmem:[%s7666_s2 + $0xf0] sm:$0xff] (!%p252_p3)  }
   0xe   : > { %s7793_s24 = smov (!%p287_p4, %s6413_s24), 1  ;;  %5991 = vmatprep.subr.bf16.mxu1 %v6568_v37  ;;  %v6331_v44 = vld [vmem:[%s7666_s2 + $0xf8] sm:$0xff]   ;;  %v6612_v45 = vld [vmem:[%s7666_s2 + $0x100] sm:$0xff]   ;;  %v6332_v56 = vld [vmem:[%s7666_s2 + $0x8] sm:$0xff]  }
   0xf   : > { %s6262_s11 = smul.u32 144, %s7793_s24  ;;  %v6618_v46 = vld [vmem:[%s7668_s4] ss:$0 sm:$0xff]  ;;  %v6334_v1 = vld [vmem:[%s7666_s2 + $0x10] sm:$0xff]   ;;  %s5032_s30 = sshll.u32 %s7793_s24, 7 }
  0x10   : > { %5463 = vmatpush3.bf16.msra.mxu0 %v6291_v2  ;;  %s7609_s10 = scalar_lea.vmem %s7671_s7, %s5032_s30 }
  0x11   : > { %s6499_s14 = scalar_lea.vmem %s7664_s0, %s6262_s11  ;;  %5464 = vmatprep.subr.bf16.mxu0 %v6292_v3  ;;  %5999 = vmatpush3.bf16.msra.mxu1 %v6568_v37 }
  0x12   : > { %v6297_v4 = vld [vmem:[%s6499_s14] sm:$0xff]   ;;  %v6298_v9 = vld [vmem:[%s6499_s14 + $0x8] sm:$0xff]   ;;  %v6299_v11 = vld [vmem:[%s6499_s14 + $0x10] sm:$0xff]   ;;  %5992 = vmatprep.subr.bf16.mxu1 %v6575_v38 }
  0x13   : > { %5474 = vmatprep.mubr.bf16.mxu0 %v6297_v4  ;;  %v6300_v14 = vld [vmem:[%s6499_s14 + $0x18] sm:$0xff]   ;;  %v6301_v15 = vld [vmem:[%s6499_s14 + $0x20] sm:$0xff]   ;;  %v6302_v16 = vld [vmem:[%s6499_s14 + $0x28] sm:$0xff]  }
  0x14   : > { %5465 = vmatpush3.bf16.msra.mxu0 %v6292_v3  ;;  %v6303_v17 = vld [vmem:[%s6499_s14 + $0x30] sm:$0xff]   ;;  %v6304_v18 = vld [vmem:[%s6499_s14 + $0x38] sm:$0xff]   ;;  %v6305_v19 = vld [vmem:[%s6499_s14 + $0x40] sm:$0xff]  }
  0x15   : > { %5466 = vmatprep.subr.bf16.mxu0 %v6293_v5  ;;  %v6306_v20 = vld [vmem:[%s6499_s14 + $0x48] sm:$0xff]   ;;  %v6307_v21 = vld [vmem:[%s6499_s14 + $0x50] sm:$0xff]   ;;  %v6308_v22 = vld [vmem:[%s6499_s14 + $0x58] sm:$0xff]   ;;  %6000 = vmatpush3.bf16.msra.mxu1 %v6575_v38 }
  0x16   : > { %v6309_v23 = vld [vmem:[%s6499_s14 + $0x60] sm:$0xff]   ;;  %v6310_v24 = vld [vmem:[%s6499_s14 + $0x68] sm:$0xff]   ;;  %v6311_v25 = vld [vmem:[%s6499_s14 + $0x70] sm:$0xff]   ;;  %5993 = vmatprep.subr.bf16.mxu1 %v6582_v39 }
  0x17   : > { %v6312_v26 = vld [vmem:[%s6499_s14 + $0x78] sm:$0xff]   ;;  %v6313_v27 = vld [vmem:[%s6499_s14 + $0x80] sm:$0xff]   ;;  %v6314_v28 = vld [vmem:[%s6499_s14 + $0x88] sm:$0xff]  }
  0x18   : > { %5467 = vmatpush3.bf16.msra.mxu0 %v6293_v5 }
  0x19   : > { %5468 = vmatprep.subr.bf16.mxu0 %v6294_v6  ;;  %6001 = vmatpush3.bf16.msra.mxu1 %v6582_v39 }
  0x1a   : > { %5994 = vmatprep.subr.bf16.mxu1 %v6589_v40 }
  0x1c   : > { %5469 = vmatpush3.bf16.msra.mxu0 %v6294_v6 }
  0x1d   : > { %5470 = vmatprep.subr.bf16.mxu0 %v6295_v7  ;;  %6002 = vmatpush3.bf16.msra.mxu1 %v6589_v40 }
  0x1e   : > { %5995 = vmatprep.subr.bf16.mxu1 %v6599_v42 }
  0x20   : > { %5471 = vmatpush3.bf16.msra.mxu0 %v6295_v7  ;;  %v6336_v7 = vld [vmem:[%s7666_s2 + $0x18] sm:$0xff]  }
  0x21   : > { %5472 = vmatprep.subr.bf16.mxu0 %v6296_v8  ;;  %6003 = vmatpush3.bf16.msra.mxu1 %v6599_v42 }
  0x22   : > { %5996 = vmatprep.subr.bf16.mxu1 %v6329_v43 }
  0x24   : > { %5473 = vmatpush3.bf16.msra.mxu0 %v6296_v8 }
  0x25   : > { %5510 = vmatprep.subr.bf16.mxu0 %v6315_v10  ;;  %6004 = vmatpush3.bf16.msra.mxu1 %v6329_v43 }
  0x26   : > { %5997 = vmatprep.subr.bf16.mxu1 %v6331_v44 }
  0x27   : > { %5475 = vmatmul.mubr.bf16.vlgmr.msra.gmra.mrb[0].mxu0 %v6298_v9 }
  0x28   : > { %5478 = vmatprep.mubr.bf16.mxu0 %v6299_v11  ;;  %5511 = vmatpush3.bf16.msra.mxu0 %v6315_v10 }
  0x29   : > { %5512 = vmatprep.subr.bf16.mxu0 %v6316_v12  ;;  %6005 = vmatpush3.bf16.msra.mxu1 %v6331_v44 }
  0x2a   : > { %5702 = vmatprep.subr.bf16.mxu1 %v6612_v45 }
  0x2c   : > { %5513 = vmatpush3.bf16.msra.mxu0 %v6316_v12 }
  0x2d   : > { %5514 = vmatprep.subr.bf16.mxu0 %v6317_v13 }
  0x2f   : > { %5479 = vmatmul.mubr.bf16.gmra.mrb[4].mxu0 %v6300_v14 }
  0x30   : > { %5482 = vmatprep.mubr.bf16.mxu0 %v6301_v15  ;;  %5515 = vmatpush3.bf16.msra.mxu0 %v6317_v13 }
  0x31   : > { %5516 = vmatprep.subr.bf16.mxu0 %v6318_v29 }
  0x34   : > { %5517 = vmatpush3.bf16.msra.mxu0 %v6318_v29 }
  0x35   : > { %5518 = vmatprep.subr.bf16.mxu0 %v6319_v30 }
  0x37   : > { %5483 = vmatmul.mubr.bf16.gmra.mrb[8].mxu0 %v6302_v16 }
  0x38   : > { %5486 = vmatprep.mubr.bf16.mxu0 %v6303_v17  ;;  %5519 = vmatpush3.bf16.msra.mxu0 %v6319_v30  ;;  %v6338_v17 = vld [vmem:[%s7666_s2 + $0x20] sm:$0xff]  }
  0x39   : > { %5520 = vmatprep.subr.bf16.mxu0 %v6320_v31 }
  0x3c   : > { %5521 = vmatpush3.bf16.msra.mxu0 %v6320_v31 }
  0x3d   : > { %5522 = vmatprep.subr.bf16.mxu0 %v6321_v32 }
  0x3f   : > { %5487 = vmatmul.mubr.bf16.gmra.mrb[12].mxu0 %v6304_v18 }
  0x40   : > { %5490 = vmatprep.mubr.bf16.mxu0 %v6305_v19  ;;  %5523 = vmatpush3.bf16.msra.mxu0 %v6321_v32 }
  0x41   : > { %5524 = vmatprep.subr.bf16.mxu0 %v6322_v33 }
  0x44   : > { %5525 = vmatpush3.bf16.msra.mxu0 %v6322_v33  ;;  %v6342_v33 = vld [vmem:[%s7666_s2 + $0x30] sm:$0xff]  }
  0x45   : > { %5558 = vmatprep.subr.bf16.mxu0 %v6330_v41 }
  0x47   : > { %5491 = vmatmul.mubr.bf16.gmra.mrb[16].mxu0 %v6306_v20 }
  0x48   : > { %5494 = vmatprep.mubr.bf16.mxu0 %v6307_v21 }
  0x4f   : > { %5495 = vmatmul.mubr.bf16.gmra.mrb[20].mxu0 %v6308_v22 }
  0x50   : > { %5498 = vmatprep.mubr.bf16.mxu0 %v6309_v23  ;;  %v6340_v23 = vld [vmem:[%s7666_s2 + $0x28] sm:$0xff]  }
  0x57   : > { %5499 = vmatmul.mubr.bf16.gmra.mrb[24].mxu0 %v6310_v24 }
  0x58   : > { %5502 = vmatprep.mubr.bf16.mxu0 %v6311_v25 }
  0x5f   : > { %5503 = vmatmul.mubr.bf16.gmra.mrb[28].mxu0 %v6312_v26 }
  0x60   : > { %5506 = vmatprep.mubr.bf16.mxu0 %v6313_v27 }
  0x67   : > { %5507 = vmatmul.mubr.bf16.gmra.mrb[32].mxu0 %v6314_v28 }
  0x68   : > { %5526 = vmatprep.mubr.bf16.mxu0 %v6424_v35 }
  0xfa   : > { %v5476_v47 = vpop.f32.mrb[0].mxu0 }
  0xfb   : > { %v561_v48 = vadd.f32 %v5476_v47, %v6618_v46  ;;  %v552_v49 = vpop.f32.mrb[1].mxu0 }
  0xfc   : > { %v5477_v50 = vpop.f32.mrb[2].mxu0 }
  0xfd   : > { %v697_v51 = vmax.f32 %v561_v48, 0.0  ;;  %v564_v52 = vadd.f32 %v5477_v50, %v6618_v46  ;;  %v555_v53 = vpop.f32.mrb[3].mxu0  ;;  %v6344_v48 = vld [vmem:[%s7666_s2 + $0x38] sm:$0xff]  }
  0xff   : > { %733 = vst [vmem:[#allocation2 + $0x18] sm:$0xff] %v697_v51  ;;  %v698_v54 = vmax.f32 %v564_v52, 0.0 }
 0x101   : > { %734 = vst [vmem:[#allocation2 + $0x20] sm:$0xff] %v698_v54  ;;  %v6622_v55 = vpack.c.bf16 %v698_v54, %v697_v51 }
 0x102   : > { %v5480_v57 = vpop.f32.mrb[4].mxu0 }
 0x103   : > { %v577_v58 = vadd.f32 %v5480_v57, %v6618_v46  ;;  %v568_v59 = vpop.f32.mrb[5].mxu0  ;;  %5527 = vmatmul.mubr.bf16.vlgmr.msra.gmra.mrb[36].mxu0 %v6622_v55 }
 0x104   : > { %v569_v60 = vadd.f32 %v6618_v46, %v568_v59  ;;  %v5481_v61 = vpop.f32.mrb[6].mxu0  ;;  %5559 = vmatpush3.bf16.msra.mxu0 %v6330_v41  ;;  %v775_v41 = vlaneseq }
 0x105   : > { %v701_v62 = vmax.f32 %v577_v58, 0.0  ;;  %v580_v63 = vadd.f32 %v5481_v61, %v6618_v46  ;;  %v571_v0 = vpop.f32.mrb[7].mxu0  ;;  %5560 = vmatprep.subr.bf16.mxu0 %v6332_v56 }
 0x106   : > { %v699_v2 = vmax.f32 %v569_v60, 0.0  ;;  %v572_v3 = vadd.f32 %v6618_v46, %v571_v0  ;;  %v6674_v51 = vshrl.u32 %v775_v41, 7  ;;  %v6684_v60 = vld [vmem:[%s7666_s2 + $0x80] sm:$0xff]  }
 0x107   : > { %737 = vst [vmem:[#allocation2 + $0x38] sm:$0xff] %v701_v62  ;;  %v702_v4 = vmax.f32 %v580_v63, 0.0 }
 0x108   : > { %735 = vst [vmem:[#allocation2 + $0x28] sm:$0xff] %v699_v2  ;;  %v700_v5 = vmax.f32 %v572_v3, 0.0  ;;  %5561 = vmatpush3.bf16.msra.mxu0 %v6332_v56  ;;  %v792_v63 = vadd.s32 128, %v6674_v51  ;;  %v798_v41 = vadd.s32 176, %v6674_v51 }
 0x109   : > { %738 = vst [vmem:[#allocation2 + $0x40] sm:$0xff] %v702_v4  ;;  %v6635_v6 = vpack.c.bf16 %v702_v4, %v701_v62  ;;  %5562 = vmatprep.subr.bf16.mxu0 %v6334_v1 }
 0x10a   : > { %736 = vst [vmem:[#allocation2 + $0x30] sm:$0xff] %v700_v5  ;;  %v5484_v8 = vpop.f32.mrb[8].mxu0  ;;  %v6640_v9 = vpack.c.bf16 %v700_v5, %v699_v2  ;;  %v824_v5 = vand.u32 15, %v792_v63 }
 0x10b   : > { %v593_v10 = vadd.f32 %v5484_v8, %v6618_v46  ;;  %v584_v11 = vpop.f32.mrb[9].mxu0 }
 0x10c   : > { %v585_v12 = vadd.f32 %v6618_v46, %v584_v11  ;;  %v5485_v13 = vpop.f32.mrb[10].mxu0  ;;  %5530 = vmatprep.mubr.bf16.mxu0 %v6640_v9  ;;  %5563 = vmatpush3.bf16.msra.mxu0 %v6334_v1  ;;  %vm5168_vm0 = vcmp.ne.s32.totalorder %v824_v5, 0 }
 0x10d   : > { %v705_v14 = vmax.f32 %v593_v10, 0.0  ;;  %v596_v15 = vadd.f32 %v5485_v13, %v6618_v46  ;;  %v587_v16 = vpop.f32.mrb[11].mxu0  ;;  %5531 = vmatmul.mubr.bf16.gmra.mrb[40].mxu0 %v6635_v6  ;;  %5564 = vmatprep.subr.bf16.mxu0 %v6336_v7  ;;  %vm6702_vm2 = vmpackc.low %vm6425_vm1, %vm5168_vm0 }
 0x10e   : > { %v703_v18 = vmax.f32 %v585_v12, 0.0  ;;  %v588_v19 = vadd.f32 %v6618_v46, %v587_v16 }
 0x10f   : > { %741 = vst [vmem:[#allocation2 + $0x58] sm:$0xff] %v705_v14  ;;  %v706_v20 = vmax.f32 %v596_v15, 0.0  ;;  %v794_v15 = vadd.s32 144, %v6674_v51 }
 0x110   : > { %739 = vst [vmem:[#allocation2 + $0x48] sm:$0xff] %v703_v18  ;;  %v704_v21 = vmax.f32 %v588_v19, 0.0  ;;  %5565 = vmatpush3.bf16.msra.mxu0 %v6336_v7  ;;  %v796_v19 = vadd.s32 160, %v6674_v51 }
 0x111   : > { %742 = vst [vmem:[#allocation2 + $0x60] sm:$0xff] %v706_v20  ;;  %v6651_v22 = vpack.c.bf16 %v706_v20, %v705_v14  ;;  %5566 = vmatprep.subr.bf16.mxu0 %v6338_v17 }
 0x112   : > { %740 = vst [vmem:[#allocation2 + $0x50] sm:$0xff] %v704_v21  ;;  %v5488_v24 = vpop.f32.mrb[12].mxu0  ;;  %v6656_v25 = vpack.c.bf16 %v704_v21, %v703_v18 }
 0x113   : > { %v609_v26 = vadd.f32 %v5488_v24, %v6618_v46  ;;  %v600_v27 = vpop.f32.mrb[13].mxu0 }
 0x114   : > { %v601_v28 = vadd.f32 %v6618_v46, %v600_v27  ;;  %v5489_v29 = vpop.f32.mrb[14].mxu0  ;;  %5534 = vmatprep.mubr.bf16.mxu0 %v6656_v25  ;;  %5567 = vmatpush3.bf16.msra.mxu0 %v6338_v17 }
 0x115   : > { %v709_v30 = vmax.f32 %v609_v26, 0.0  ;;  %v612_v31 = vadd.f32 %v5489_v29, %v6618_v46  ;;  %v603_v32 = vpop.f32.mrb[15].mxu0  ;;  %5535 = vmatmul.mubr.bf16.gmra.mrb[44].mxu0 %v6651_v22  ;;  %5568 = vmatprep.subr.bf16.mxu0 %v6340_v23  ;;  %v826_v26 = vand.u32 15, %v794_v15 }
 0x116   : > { %v707_v34 = vmax.f32 %v601_v28, 0.0  ;;  %v604_v35 = vadd.f32 %v6618_v46, %v603_v32 }
 0x117   : > { %745 = vst [vmem:[#allocation2 + $0x78] sm:$0xff] %v709_v30  ;;  %v710_v43 = vmax.f32 %v612_v31, 0.0  ;;  %vm5169_vm3 = vcmp.ne.s32.totalorder %v826_v26, 0 }
 0x118   : > { %743 = vst [vmem:[#allocation2 + $0x68] sm:$0xff] %v707_v34  ;;  %v708_v44 = vmax.f32 %v604_v35, 0.0  ;;  %5569 = vmatpush3.bf16.msra.mxu0 %v6340_v23  ;;  %vm6728_vm5 = vmpackc.low %vm6425_vm1, %vm5169_vm3 }
 0x119   : > { %746 = vst [vmem:[#allocation2 + $0x80] sm:$0xff] %v710_v43  ;;  %v6667_v47 = vpack.c.bf16 %v710_v43, %v709_v30  ;;  %5570 = vmatprep.subr.bf16.mxu0 %v6342_v33 }
 0x11a   : > { %744 = vst [vmem:[#allocation2 + $0x70] sm:$0xff] %v708_v44  ;;  %v5492_v49 = vpop.f32.mrb[16].mxu0  ;;  %v6672_v50 = vpack.c.bf16 %v708_v44, %v707_v34 }
 0x11b   : > { %v625_v52 = vadd.f32 %v5492_v49, %v6618_v46  ;;  %v616_v53 = vpop.f32.mrb[17].mxu0 }
 0x11c   : > { %v617_v54 = vadd.f32 %v6618_v46, %v616_v53  ;;  %v5493_v56 = vpop.f32.mrb[18].mxu0  ;;  %5538 = vmatprep.mubr.bf16.mxu0 %v6672_v50  ;;  %5571 = vmatpush3.bf16.msra.mxu0 %v6342_v33  ;;  %v828_v33 = vand.u32 15, %v796_v19 }
 0x11d   : > { %v713_v57 = vmax.f32 %v625_v52, 0.0  ;;  %v628_v58 = vadd.f32 %v5493_v56, %v6618_v46  ;;  %v619_v59 = vpop.f32.mrb[19].mxu0  ;;  %5539 = vmatmul.mubr.bf16.gmra.mrb[48].mxu0 %v6667_v47  ;;  %5572 = vmatprep.subr.bf16.mxu0 %v6344_v48  ;;  %v800_v56 = vadd.s32 192, %v6674_v51 }
 0x11e   : > { %v711_v61 = vmax.f32 %v617_v54, 0.0  ;;  %v620_v62 = vadd.f32 %v6618_v46, %v619_v59  ;;  %vm6722_vm4 = vcmp.ne.s32.totalorder %v828_v33, 0  ;;  %v7714_v33 = vmov 0 }
 0x11f   : > { %749 = vst [vmem:[#allocation2 + $0x98] sm:$0xff] %v713_v57  ;;  %v714_v0 = vmax.f32 %v628_v58, 0.0  ;;  %v7696_v58 = vmov 0  ;;  %vm6739_vm6 = vmpackc.low %vm6425_vm1, %vm6722_vm4 }
 0x120   : > { %747 = vst [vmem:[#allocation2 + $0x88] sm:$0xff] %v711_v61  ;;  %v712_v1 = vmax.f32 %v620_v62, 0.0  ;;  %5573 = vmatpush3.bf16.msra.mxu0 %v6344_v48  ;;  %v7697_v58 = vsel %vm6728_vm5, 4294967295, %v7696_v58 }
 0x121   : > { %750 = vst [vmem:[#allocation2 + $0xa0] sm:$0xff] %v714_v0  ;;  %v6688_v2 = vpack.c.bf16 %v714_v0, %v713_v57  ;;  %5606 = vmatprep.subr.bf16.mxu0 %v6684_v60 }
 0x122   : > { %748 = vst [vmem:[#allocation2 + $0x90] sm:$0xff] %v712_v1  ;;  %v5496_v3 = vpop.f32.mrb[20].mxu0  ;;  %v6691_v4 = vpack.c.bf16 %v712_v1, %v711_v61  ;;  %v830_v61 = vand.u32 15, %v798_v41 }
 0x123   : > { %v641_v7 = vadd.f32 %v5496_v3, %v6618_v46  ;;  %v632_v8 = vpop.f32.mrb[21].mxu0 }
 0x124   : > { %v633_v10 = vadd.f32 %v6618_v46, %v632_v8  ;;  %v5497_v11 = vpop.f32.mrb[22].mxu0  ;;  %5542 = vmatprep.mubr.bf16.mxu0 %v6691_v4  ;;  %vm6756_vm7 = vcmp.ne.s32.totalorder %v830_v61, 0 }
 0x125   : > { %v717_v12 = vmax.f32 %v641_v7, 0.0  ;;  %v644_v13 = vadd.f32 %v5497_v11, %v6618_v46  ;;  %v635_v14 = vpop.f32.mrb[23].mxu0  ;;  %5543 = vmatmul.mubr.bf16.gmra.mrb[52].mxu0 %v6688_v2  ;;  %v7698_v7 = vmov 0  ;;  %vm6775_vm8 = vmpackc.low %vm6425_vm1, %vm6756_vm7 }
 0x126   : > { %v715_v16 = vmax.f32 %v633_v10, 0.0  ;;  %v636_v17 = vadd.f32 %v6618_v46, %v635_v14  ;;  %v7699_v7 = vsel %vm6739_vm6, 4294967295, %v7698_v7  ;;  %v6335_v10 = vld [vmem:[%s7666_s2 + $0x108] sm:$0xff]   ;;  %v832_v14 = vand.u32 15, %v800_v56 }
 0x127   : > { %753 = vst [vmem:[#allocation2 + $0xb8] sm:$0xff] %v717_v12  ;;  %v718_v18 = vmax.f32 %v644_v13, 0.0 }
 0x128   : > { %751 = vst [vmem:[#allocation2 + $0xa8] sm:$0xff] %v715_v16  ;;  %v716_v20 = vmax.f32 %v636_v17, 0.0  ;;  %v1964_v21 = vld [vmem:[#allocation2 + $0x9f] sm:$0xff]  ;;  %vm6779_vm9 = vcmp.ne.s32.totalorder %v832_v14, 0  ;;  %v6373_v17 = vld [vmem:[%s7666_s2 + $0x1d0] sm:$0xff]  }
 0x129   : > { %754 = vst [vmem:[#allocation2 + $0xc0] sm:$0xff] %v718_v18  ;;  %v1963_v24 = vld [vmem:[#allocation2 + $0x97] sm:$0xff]  ;;  %v6706_v27 = vpack.c.bf16 %v718_v18, %v717_v12  ;;  %vm6797_vm11 = vmpackc.low %vm6425_vm1, %vm6779_vm9 }
 0x12a   : > { %752 = vst [vmem:[#allocation2 + $0xb0] sm:$0xff] %v716_v20  ;;  %v5500_v28 = vpop.f32.mrb[24].mxu0  ;;  %v6708_v29 = vpack.c.bf16 %v1964_v21, %v1963_v24  ;;  %v6710_v30 = vpack.c.bf16 %v716_v20, %v715_v16  ;;  %v802_v21 = vadd.s32 208, %v6674_v51  ;;  %v808_v24 = vand.u32 15, %v6674_v51 }
 0x12b   : > { %v657_v31 = vadd.f32 %v5500_v28, %v6618_v46  ;;  %v648_v32 = vpop.f32.mrb[25].mxu0 }
 0x12c   : > { %v649_v34 = vadd.f32 %v6618_v46, %v648_v32  ;;  %v5501_v35 = vpop.f32.mrb[26].mxu0  ;;  %5686 = vmatprep.mubr.msk.bf16.mxu1 %vm6702_vm2, %v6708_v29  ;;  %5546 = vmatprep.mubr.bf16.mxu0 %v6710_v30  ;;  %v7702_v32 = vmov 0  ;;  %v834_v54 = vand.u32 15, %v802_v21  ;;  %vm6787_vm10 = vcmp.ne.s32.totalorder %v808_v24, 0 }
 0x12d   : > { %v721_v43 = vmax.f32 %v657_v31, 0.0  ;;  %v660_v44 = vadd.f32 %v5501_v35, %v6618_v46  ;;  %v651_v48 = vpop.f32.mrb[27].mxu0  ;;  %5547 = vmatmul.mubr.bf16.gmra.mrb[56].mxu0 %v6706_v27  ;;  %v6337_v31 = vld [vmem:[%s7666_s2 + $0x110] sm:$0xff]   ;;  %v7703_v32 = vsel %vm6775_vm8, 4294967295, %v7702_v32  ;;  %vm6816_vm12 = vmpackc.low %vm6425_vm1, %vm6787_vm10 }
 0x12e   : > { %v719_v49 = vmax.f32 %v649_v34, 0.0  ;;  %v652_v52 = vadd.f32 %v6618_v46, %v651_v48  ;;  %v804_v34 = vadd.s32 224, %v6674_v51  ;;  %v778_v48 = vadd.s32 16, %v6674_v51 }
 0x12f   : > { %757 = vst [vmem:[#allocation2 + $0xd8] sm:$0xff] %v721_v43  ;;  %v722_v53 = vmax.f32 %v660_v44, 0.0  ;;  %v1965_v62 = vld [vmem:[#allocation2 + $0xa7] sm:$0xff]  ;;  %v905_v44 = vld [vmem:[#allocation2 + $0xf] sm:$0xff]  ;;  %vm5173_vm13 = vcmp.ne.s32.totalorder %v834_v54, 0 }
 0x130   : > { %755 = vst [vmem:[#allocation2 + $0xc8] sm:$0xff] %v719_v49  ;;  %v720_v57 = vmax.f32 %v652_v52, 0.0  ;;  %v1968_v59 = vld [vmem:[#allocation2 + $0xbf] sm:$0xff]  ;;  %vm6836_vm15 = vmpackc.low %vm6425_vm1, %vm5173_vm13 }
 0x131   : > { %758 = vst [vmem:[#allocation2 + $0xe0] sm:$0xff] %v722_v53  ;;  %v1966_v63 = vld [vmem:[#allocation2 + $0xaf] sm:$0xff]  ;;  %v1967_v0 = vld [vmem:[#allocation2 + $0xb7] sm:$0xff]  ;;  %v6732_v1 = vpack.c.bf16 %v722_v53, %v721_v43  ;;  %v904_v43 = vld [vmem:[#allocation2 + $0x7] sm:$0xff]  ;;  %v7715_v33 = vsel %vm6836_vm15, 4294967295, %v7714_v33 }
 0x132   : > { %756 = vst [vmem:[#allocation2 + $0xd0] sm:$0xff] %v720_v57  ;;  %v5504_v3 = vpop.f32.mrb[28].mxu0  ;;  %v6734_v5 = vpack.c.bf16 %v1966_v63, %v1965_v62  ;;  %v6743_v8 = vpack.c.bf16 %v1968_v59, %v1967_v0  ;;  %v6748_v11 = vpack.c.bf16 %v720_v57, %v719_v49  ;;  %v780_v59 = vadd.s32 32, %v6674_v51 }
 0x133   : > { %v673_v12 = vadd.f32 %v5504_v3, %v6618_v46  ;;  %v664_v13 = vpop.f32.mrb[29].mxu0  ;;  %v7708_v63 = vmov 0  ;;  %v6339_v3 = vld [vmem:[%s7666_s2 + $0x118] sm:$0xff]   ;;  %v4550_v14 = vpack.c.bf16 %v905_v44, %v904_v43  ;;  %v7720_v57 = vmov 0 }
 0x134   : > { %v665_v15 = vadd.f32 %v6618_v46, %v664_v13  ;;  %v5505_v16 = vpop.f32.mrb[30].mxu0  ;;  %5687 = vmatmul.mubr.msk.bf16.vlgmr.msra.gmra.mrb[0].mxu1 %vm6728_vm5, %v6734_v5  ;;  %5550 = vmatprep.mubr.bf16.mxu0 %v6748_v11  ;;  %v7709_v63 = vsel %vm6797_vm11, 4294967295, %v7708_v63  ;;  %v836_v13 = vand.u32 15, %v804_v34  ;;  %v812_v21 = vand.u32 15, %v780_v59  ;;  %v907_v34 = vld [vmem:[#allocation2 + $0x1f] sm:$0xff] }
 0x135   : > { %v725_v18 = vmax.f32 %v673_v12, 0.0  ;;  %v676_v19 = vadd.f32 %v5505_v16, %v6618_v46  ;;  %5703 = vmatpush3.bf16.msra.mxu1 %v6612_v45  ;;  %v667_v20 = vpop.f32.mrb[31].mxu0  ;;  %5690 = vmatprep.mubr.msk.bf16.mxu1 %vm6739_vm6, %v6743_v8 }
 0x136   : > { %v723_v26 = vmax.f32 %v665_v15, 0.0  ;;  %v668_v28 = vadd.f32 %v6618_v46, %v667_v20  ;;  %5704 = vmatprep.subr.bf16.mxu1 %v6335_v10  ;;  %5551 = vmatmul.mubr.bf16.gmra.mrb[60].mxu0 %v6732_v1  ;;  %v806_v20 = vadd.s32 240, %v6674_v51  ;;  %vm6829_vm14 = vcmp.ne.s32.totalorder %v836_v13, 0  ;;  %v906_v13 = vld [vmem:[#allocation2 + $0x17] sm:$0xff] }
 0x137   : > { %761 = vst [vmem:[#allocation2 + $0xf8] sm:$0xff] %v725_v18  ;;  %v726_v45 = vmax.f32 %v676_v19, 0.0  ;;  %v1969_v49 = vld [vmem:[#allocation2 + $0xc7] sm:$0xff]  ;;  %vm6845_vm3 = vcmp.ne.s32.totalorder %v812_v21, 0  ;;  %vm6855_vm4 = vmpackc.low %vm6425_vm1, %vm6829_vm14 }
 0x138   : > { %759 = vst [vmem:[#allocation2 + $0xe8] sm:$0xff] %v723_v26  ;;  %v724_v35 = vmax.f32 %v668_v28, 0.0  ;;  %v1972_v41 = vld [vmem:[#allocation2 + $0xdf] sm:$0xff]  ;;  %v7721_v57 = vsel %vm6855_vm4, 4294967295, %v7720_v57  ;;  %vm6881_vm9 = vmpackc.low %vm6425_vm1, %vm6845_vm3 }
 0x139   : > { %762 = vst [vmem:[#allocation2 + $0x100] sm:$0xff] %v726_v45  ;;  %5705 = vmatpush3.bf16.msra.mxu1 %v6335_v10  ;;  %v1970_v52 = vld [vmem:[#allocation2 + $0xcf] sm:$0xff]  ;;  %v1971_v53 = vld [vmem:[#allocation2 + $0xd7] sm:$0xff]  ;;  %v6785_v56 = vpack.c.bf16 %v726_v45, %v725_v18  ;;  %v810_v18 = vand.u32 15, %v778_v48  ;;  %v6341_v28 = vld [vmem:[%s7666_s2 + $0x120] sm:$0xff]  }
 0x13a   : > { %760 = vst [vmem:[#allocation2 + $0xf0] sm:$0xff] %v724_v35  ;;  %v5508_v61 = vpop.f32.mrb[32].mxu0  ;;  %5706 = vmatprep.subr.bf16.mxu1 %v6337_v31  ;;  %v6792_v62 = vpack.c.bf16 %v1970_v52, %v1969_v49  ;;  %v6801_v0 = vpack.c.bf16 %v1972_v41, %v1971_v53  ;;  %v6806_v10 = vpack.c.bf16 %v724_v35, %v723_v26  ;;  %v782_v41 = vadd.s32 48, %v6674_v51  ;;  %v2948_v23 = vld [vmem:[#allocation2 + $0xd7] sm:$0xff] }
 0x13b   : > { %v680_v12 = vpop.f32.mrb[33].mxu0  ;;  %vm6840_vm0 = vcmp.ne.s32.totalorder %v810_v18, 0  ;;  %v838_v49 = vand.u32 15, %v806_v20  ;;  %v784_v53 = vadd.s32 64, %v6674_v51  ;;  %v6343_v61 = vld [vmem:[%s7666_s2 + $0x128] sm:$0xff]   ;;  %v6375_v18 = vld [vmem:[%s7666_s2 + $0x1e0] sm:$0xff]  }
 0x13c   : > { %v681_v15 = vadd.f32 %v6618_v46, %v680_v12  ;;  %v5509_v16 = vpop.f32.mrb[34].mxu0  ;;  %5691 = vmatmul.mubr.msk.bf16.gmra.mrb[4].mxu1 %vm6775_vm8, %v6792_v62  ;;  %5554 = vmatprep.mubr.bf16.mxu0 %v6806_v10  ;;  %vm6869_vm7 = vmpackc.low %vm6425_vm1, %vm6840_vm0  ;;  %v6352_v20 = vld [vmem:[%s7666_s2 + $0x88] sm:$0xff]  }
 0x13d   : > { %5707 = vmatpush3.bf16.msra.mxu1 %v6337_v31  ;;  %v683_v19 = vpop.f32.mrb[35].mxu0  ;;  %5694 = vmatprep.mubr.msk.bf16.mxu1 %vm6797_vm11, %v6801_v0  ;;  %v908_v16 = vld [vmem:[#allocation2 + $0x27] sm:$0xff]  ;;  %vm5175_vm10 = vcmp.ne.s32.totalorder %v838_v49, 0  ;;  %v911_v31 = vld [vmem:[#allocation2 + $0x3f] sm:$0xff]  ;;  %v7728_v49 = vmov 0 }
 0x13e   : > { %v727_v24 = vmax.f32 %v681_v15, 0.0  ;;  %v684_v26 = vadd.f32 %v6618_v46, %v683_v19  ;;  %5708 = vmatprep.subr.bf16.mxu1 %v6339_v3  ;;  %5555 = vmatmul.mubr.bf16.gmra.mrb[64].mxu0 %v6785_v56  ;;  %v6876_v15 = vpack.c.bf16 %v907_v34, %v906_v13  ;;  %v814_v19 = vand.u32 15, %v782_v41  ;;  %vm6904_vm13 = vmpackc.low %vm6425_vm1, %vm5175_vm10  ;;  %v910_v41 = vld [vmem:[#allocation2 + $0x37] sm:$0xff] }
 0x13f   : > { %5574 = vmatprep.mubr.msk.bf16.mxu0 %vm6816_vm12, %v4550_v14  ;;  %v1973_v43 = vld [vmem:[#allocation2 + $0xe7] sm:$0xff]  ;;  %v6923_v52 = vpack.c.bf16 %v911_v31, %v910_v41  ;;  %v6355_v13 = vld [vmem:[%s7666_s2 + $0x98] sm:$0xff]  }
 0x140   : > { %763 = vst [vmem:[#allocation2 + $0x108] sm:$0xff] %v727_v24  ;;  %v728_v45 = vmax.f32 %v684_v26, 0.0  ;;  %v1976_v46 = vld [vmem:[#allocation2 + $0xff] sm:$0xff]  ;;  %v6345_v26 = vld [vmem:[%s7666_s2 + $0x130] sm:$0xff]   ;;  %vm5163_vm14 = vcmp.ne.s32.totalorder %v814_v19, 0  ;;  %v916_v41 = vld [vmem:[#allocation2 + $0x67] sm:$0xff] }
 0x141   : > { %5709 = vmatpush3.bf16.msra.mxu1 %v6339_v3  ;;  %v1974_v44 = vld [vmem:[#allocation2 + $0xef] sm:$0xff]  ;;  %v1975_v48 = vld [vmem:[#allocation2 + $0xf7] sm:$0xff]  ;;  %vm6917_vm3 = vmpackc.low %vm6425_vm1, %vm5163_vm14 }
 0x142   : > { %764 = vst [vmem:[#allocation2 + $0x110] sm:$0xff] %v728_v45  ;;  %5710 = vmatprep.subr.bf16.mxu1 %v6341_v28  ;;  %v6850_v54 = vpack.c.bf16 %v1974_v44, %v1973_v43  ;;  %v6859_v59 = vpack.c.bf16 %v1976_v46, %v1975_v48  ;;  %v909_v3 = vld [vmem:[#allocation2 + $0x2f] sm:$0xff]  ;;  %v6864_v12 = vpack.c.bf16 %v728_v45, %v727_v24  ;;  %v816_v24 = vand.u32 15, %v784_v53  ;;  %v6346_v44 = vld [vmem:[%s7666_s2 + $0x138] sm:$0xff]   ;;  %v912_v53 = vld [vmem:[#allocation2 + $0x47] sm:$0xff] }
 0x143   : > { %v6891_v21 = vpack.c.bf16 %v909_v3, %v908_v16  ;;  %v786_v45 = vadd.s32 80, %v6674_v51  ;;  %v6354_v46 = vld [vmem:[%s7666_s2 + $0x90] sm:$0xff]   ;;  %v7729_v49 = vsel %vm6917_vm3, 4294967295, %v7728_v49  ;;  %v915_v31 = vld [vmem:[#allocation2 + $0x5f] sm:$0xff] }
 0x144   : > { %5695 = vmatmul.mubr.msk.bf16.gmra.mrb[8].mxu1 %vm6836_vm15, %v6850_v54  ;;  %vm5164_vm0 = vcmp.ne.s32.totalorder %v816_v24, 0  ;;  %v913_v48 = vld [vmem:[#allocation2 + $0x4f] sm:$0xff]  ;;  %v6357_v24 = vld [vmem:[%s7666_s2 + $0xa0] sm:$0xff]   ;;  %v6374_v14 = vld [vmem:[%s7666_s2 + $0x1d8] sm:$0xff]  }
 0x145   : > { %5711 = vmatpush3.bf16.msra.mxu1 %v6341_v28  ;;  %5698 = vmatprep.mubr.msk.bf16.mxu1 %vm6855_vm4, %v6859_v59  ;;  %v7726_v28 = vmov 0  ;;  %vm6926_vm10 = vmpackc.low %vm6425_vm1, %vm5164_vm0  ;;  %v818_v3 = vand.u32 15, %v786_v45  ;;  %v6934_v16 = vpack.c.bf16 %v913_v48, %v912_v53  ;;  %v6348_v45 = vld [vmem:[%s7666_s2 + $0x148] sm:$0xff]   ;;  %v918_v53 = vld [vmem:[#allocation2 + $0x77] sm:$0xff] }
 0x146   : > { %5712 = vmatprep.subr.bf16.mxu1 %v6343_v61  ;;  %5575 = vmatmul.mubr.msk.bf16.vlgmr.msra.gmra.mrb[36].mxu0 %vm6869_vm7, %v6876_v15  ;;  %v7727_v28 = vsel %vm6904_vm13, 4294967295, %v7726_v28 }
 0x147   : > { %5578 = vmatprep.mubr.msk.bf16.mxu0 %vm6881_vm9, %v6891_v21  ;;  %5607 = vmatpush3.bf16.msra.mxu0 %v6684_v60  ;;  %v1977_v34 = vld [vmem:[#allocation2 + $0x107] sm:$0xff]  ;;  %v788_v60 = vadd.s32 96, %v6674_v51  ;;  %vm5165_vm14 = vcmp.ne.s32.totalorder %v818_v3, 0  ;;  %v919_v3 = vld [vmem:[#allocation2 + $0x7f] sm:$0xff] }
 0x148   : > { %5608 = vmatprep.subr.bf16.mxu0 %v6352_v20 }
 0x149   : > { %5713 = vmatpush3.bf16.msra.mxu1 %v6343_v61  ;;  %v1978_v35 = vld [vmem:[#allocation2 + $0x10f] sm:$0xff]  ;;  %v7730_v61 = vmov 0  ;;  %v820_v19 = vand.u32 15, %v788_v60  ;;  %v6379_v60 = vld [vmem:[%s7666_s2 + $0x200] sm:$0xff]  }
 0x14a   : > { %5714 = vmatprep.subr.bf16.mxu1 %v6345_v26  ;;  %v4754_v43 = vpack.c.bf16 %v1978_v35, %v1977_v34  ;;  %v7731_v61 = vsel %vm6926_vm10, 4294967295, %v7730_v61  ;;  %v917_v34 = vld [vmem:[#allocation2 + $0x6f] sm:$0xff] }
 0x14b   : > { %5609 = vmatpush3.bf16.msra.mxu0 %v6352_v20  ;;  %v6347_v20 = vld [vmem:[%s7666_s2 + $0x140] sm:$0xff]   ;;  %vm5166_vm0 = vcmp.ne.s32.totalorder %v820_v19, 0  ;;  %v6969_v48 = vpack.c.bf16 %v917_v34, %v916_v41  ;;  %v6350_v19 = vld [vmem:[%s7666_s2 + $0x158] sm:$0xff]   ;;  %v785_v41 = vadd.s32 72, %v6674_v51 }
 0x14c   : > { %5699 = vmatmul.mubr.msk.bf16.gmra.mrb[12].mxu1 %vm6904_vm13, %v4754_v43  ;;  %5610 = vmatprep.subr.bf16.mxu0 %v6354_v46 }
 0x14d   : > { %5715 = vmatpush3.bf16.msra.mxu1 %v6345_v26  ;;  %5718 = vmatprep.mubr.bf16.mxu1 %v6622_v55  ;;  %v790_v55 = vadd.s32 112, %v6674_v51  ;;  %v914_v26 = vld [vmem:[#allocation2 + $0x57] sm:$0xff] }
 0x14e   : > { %5716 = vmatprep.subr.bf16.mxu1 %v6346_v44  ;;  %5579 = vmatmul.mubr.msk.bf16.gmra.mrb[40].mxu0 %vm6917_vm3, %v6923_v52  ;;  %v6958_v35 = vpack.c.bf16 %v915_v31, %v914_v26  ;;  %vm6961_vm3 = vmpackc.low %vm6425_vm1, %vm5166_vm0  ;;  %v6361_v26 = vld [vmem:[%s7666_s2 + $0xb8] sm:$0xff]  }
 0x14f   : > { %5582 = vmatprep.mubr.msk.bf16.mxu0 %vm6926_vm10, %v6934_v16  ;;  %5611 = vmatpush3.bf16.msra.mxu0 %v6354_v46  ;;  %vm6953_vm10 = vmpackc.low %vm6425_vm1, %vm5165_vm14  ;;  %v822_v43 = vand.u32 15, %v790_v55  ;;  %v6992_v55 = vpack.c.bf16 %v919_v3, %v918_v53  ;;  %v6378_v46 = vld [vmem:[%s7666_s2 + $0x1f8] sm:$0xff]  }
 0x150   : > { %5612 = vmatprep.subr.bf16.mxu0 %v6355_v13 }
 0x151   : > { %5717 = vmatpush3.bf16.msra.mxu1 %v6346_v44  ;;  %v6358_v44 = vld [vmem:[%s7666_s2 + $0xa8] sm:$0xff]   ;;  %vm5167_vm14 = vcmp.ne.s32.totalorder %v822_v43, 0 }
 0x152   : > { %5750 = vmatprep.subr.bf16.mxu1 %v6347_v20  ;;  %vm6987_vm0 = vmpackc.low %vm6425_vm1, %vm5167_vm14  ;;  %v1550_v43 = vld [vmem:[#allocation2 + $0x29] sm:$0xff] }
 0x153   : > { %5613 = vmatpush3.bf16.msra.mxu0 %v6355_v13  ;;  %v921_v13 = vld [vmem:[#allocation2 + $0x8f] sm:$0xff] }
 0x154   : > { %5719 = vmatmul.mubr.bf16.vlgmr.msra.gmra.mrb[16].mxu1 %v6640_v9  ;;  %5614 = vmatprep.subr.bf16.mxu0 %v6357_v24  ;;  %v6349_v9 = vld [vmem:[%s7666_s2 + $0x150] sm:$0xff]  }
 0x155   : > { %5751 = vmatpush3.bf16.msra.mxu1 %v6347_v20  ;;  %5722 = vmatprep.mubr.bf16.mxu1 %v6635_v6  ;;  %v6360_v6 = vld [vmem:[%s7666_s2 + $0xb0] sm:$0xff]   ;;  %v2949_v20 = vld [vmem:[#allocation2 + $0xdf] sm:$0xff] }
 0x156   : > { %5752 = vmatprep.subr.bf16.mxu1 %v6348_v45  ;;  %5583 = vmatmul.mubr.msk.bf16.gmra.mrb[44].mxu0 %vm6953_vm10, %v6958_v35 }
 0x157   : > { %5586 = vmatprep.mubr.msk.bf16.mxu0 %vm6961_vm3, %v6969_v48  ;;  %5615 = vmatpush3.bf16.msra.mxu0 %v6357_v24  ;;  %v920_v24 = vld [vmem:[#allocation2 + $0x87] sm:$0xff] }
 0x158   : > { %5616 = vmatprep.subr.bf16.mxu0 %v6358_v44  ;;  %v6998_v31 = vpack.c.bf16 %v921_v13, %v920_v24  ;;  %v817_v13 = vand.u32 15, %v785_v41  ;;  %v1554_v24 = vld [vmem:[#allocation2 + $0x49] sm:$0xff] }
 0x159   : > { %5753 = vmatpush3.bf16.msra.mxu1 %v6348_v45  ;;  %v6359_v45 = vld [vmem:[%s7666_s2 + $0x170] sm:$0xff]  }
 0x15a   : > { %5754 = vmatprep.subr.bf16.mxu1 %v6349_v9  ;;  %v6365_v41 = vld [vmem:[%s7666_s2 + $0x190] sm:$0xff]  }
 0x15b   : > { %5617 = vmatpush3.bf16.msra.mxu0 %v6358_v44  ;;  %v1551_v44 = vld [vmem:[#allocation2 + $0x31] sm:$0xff] }
 0x15c   : > { %5723 = vmatmul.mubr.bf16.gmra.mrb[20].mxu1 %v6656_v25  ;;  %5618 = vmatprep.subr.bf16.mxu0 %v6360_v6  ;;  %v6353_v25 = vld [vmem:[%s7666_s2 + $0x160] sm:$0xff]   ;;  %v7078_v3 = vpack.c.bf16 %v1551_v44, %v1550_v43  ;;  %v797_v44 = vadd.s32 168, %v6674_v51 }
 0x15d   : > { %5726 = vmatprep.mubr.bf16.mxu1 %v6651_v22  ;;  %5755 = vmatpush3.bf16.msra.mxu1 %v6349_v9  ;;  %v6356_v22 = vld [vmem:[%s7666_s2 + $0x168] sm:$0xff]   ;;  %v2589_v9 = vld [vmem:[#allocation2 + $0x19] sm:$0xff] }
 0x15e   : > { %5587 = vmatmul.mubr.msk.bf16.gmra.mrb[48].mxu0 %vm6987_vm0, %v6992_v55  ;;  %5756 = vmatprep.subr.bf16.mxu1 %v6350_v19  ;;  %v2602_v43 = vld [vmem:[#allocation2 + $0x81] sm:$0xff] }
 0x15f   : > { %5590 = vmatprep.mubr.msk.bf16.mxu0 %vm6702_vm2, %v6998_v31  ;;  %5619 = vmatpush3.bf16.msra.mxu0 %v6360_v6  ;;  %v7742_v6 = vmov 0 }
 0x160   : > { %5620 = vmatprep.subr.bf16.mxu0 %v6361_v26 }
 0x161   : > { %5757 = vmatpush3.bf16.msra.mxu1 %v6350_v19  ;;  %v2594_v19 = vld [vmem:[#allocation2 + $0x41] sm:$0xff] }
 0x162   : > { %5758 = vmatprep.subr.bf16.mxu1 %v6353_v25 }
 0x163   : > { %5621 = vmatpush3.bf16.msra.mxu0 %v6361_v26  ;;  %v1555_v26 = vld [vmem:[#allocation2 + $0x51] sm:$0xff] }
 0x164   : > { %5727 = vmatmul.mubr.bf16.gmra.mrb[24].mxu1 %v6672_v50  ;;  %5654 = vmatprep.subr.bf16.mxu0 %v6561_v36  ;;  %v7035_v50 = vld [vmem:[%s7666_s2 + $0x180] sm:$0xff]  }
 0x165   : > { %5730 = vmatprep.mubr.bf16.mxu1 %v6667_v47  ;;  %5759 = vmatpush3.bf16.msra.mxu1 %v6353_v25  ;;  %v6362_v47 = vld [vmem:[%s7666_s2 + $0x178] sm:$0xff]  }
 0x166   : > { %5591 = vmatmul.mubr.msk.bf16.gmra.mrb[52].mxu0 %vm6728_vm5, %v6708_v29  ;;  %5760 = vmatprep.subr.bf16.mxu1 %v6356_v22  ;;  %v777_v29 = vadd.s32 8, %v6674_v51  ;;  %v2593_v25 = vld [vmem:[#allocation2 + $0x39] sm:$0xff] }
 0x167   : > { %5594 = vmatprep.mubr.msk.bf16.mxu0 %vm6739_vm6, %v6734_v5  ;;  %v781_v5 = vadd.s32 40, %v6674_v51 }
 0x169   : > { %5761 = vmatpush3.bf16.msra.mxu1 %v6356_v22  ;;  %v813_v34 = vand.u32 15, %v781_v5  ;;  %v7744_v22 = vmov 0  ;;  %v6364_v5 = vld [vmem:[%s7666_s2 + $0x188] sm:$0xff]  }
 0x16a   : > { %5762 = vmatprep.subr.bf16.mxu1 %v6359_v45 }
 0x16c   : > { %5731 = vmatmul.mubr.bf16.gmra.mrb[28].mxu1 %v6691_v4  ;;  %v779_v4 = vadd.s32 24, %v6674_v51 }
 0x16d   : > { %5734 = vmatprep.mubr.bf16.mxu1 %v6688_v2  ;;  %5763 = vmatpush3.bf16.msra.mxu1 %v6359_v45  ;;  %v809_v2 = vand.u32 15, %v777_v29  ;;  %v7746_v45 = vmov 0  ;;  %v7106_v29 = vpack.c.bf16 %v1555_v26, %v1554_v24  ;;  %v6396_v24 = vld [vmem:[%s7666_s2 + $0xf0] sm:$0xff]  }
 0x16e   : > { %5595 = vmatmul.mubr.msk.bf16.gmra.mrb[56].mxu0 %vm6775_vm8, %v6743_v8  ;;  %5764 = vmatprep.subr.bf16.mxu1 %v6362_v47  ;;  %v1546_v8 = vld [vmem:[#allocation2 + $0x9] sm:$0xff] }
 0x16f   : > { %5598 = vmatprep.mubr.msk.bf16.mxu0 %vm6797_vm11, %v6792_v62  ;;  %vm5176_vm14 = vcmp.ne.s32.totalorder %v809_v2, 15  ;;  %v1547_v62 = vld [vmem:[#allocation2 + $0x11] sm:$0xff] }
 0x170   : > { %vm7054_vm11 = vmpackc.low %vm5176_vm14, %vm6425_vm1  ;;  %vm5178_vm14 = vcmp.ne.s32.totalorder %v813_v34, 15  ;;  %v7750_v34 = vmov 0 }
 0x171   : > { %5765 = vmatpush3.bf16.msra.mxu1 %v6362_v47 }
 0x172   : > { %5798 = vmatprep.subr.bf16.mxu1 %v7035_v50 }
 0x174   : > { %5735 = vmatmul.mubr.bf16.gmra.mrb[0].mxu1 %v6710_v30  ;;  %v811_v30 = vand.u32 15, %v779_v4  ;;  %v793_v4 = vadd.s32 136, %v6674_v51 }
 0x175   : > { %5738 = vmatprep.mubr.bf16.mxu1 %v6706_v27  ;;  %v7738_v27 = vmov 0 }
 0x176   : > { %5599 = vmatmul.mubr.msk.bf16.gmra.mrb[60].mxu0 %vm6836_vm15, %v6801_v0  ;;  %v7739_v27 = vsel %vm7054_vm11, 4294967295, %v7738_v27  ;;  %v4622_v0 = vpack.c.bf16 %v1547_v62, %v1546_v8  ;;  %v1558_v8 = vld [vmem:[#allocation2 + $0x69] sm:$0xff]  ;;  %v1559_v62 = vld [vmem:[#allocation2 + $0x71] sm:$0xff] }
 0x177   : > { %5602 = vmatprep.mubr.msk.bf16.mxu0 %vm6855_vm4, %v6850_v54  ;;  %vm5177_vm4 = vcmp.ne.s32.totalorder %v811_v30, 15  ;;  %v2590_v54 = vld [vmem:[#allocation2 + $0x21] sm:$0xff]  ;;  %v2597_v30 = vld [vmem:[#allocation2 + $0x59] sm:$0xff] }
 0x178   : > { %vm7067_vm15 = vmpackc.low %vm5177_vm4, %vm6425_vm1 }
 0x17c   : > { %5739 = vmatmul.mubr.bf16.gmra.mrb[4].mxu1 %v6748_v11  ;;  %v783_v11 = vadd.s32 56, %v6674_v51 }
 0x17d   : > { %5742 = vmatprep.mubr.bf16.mxu1 %v6732_v1  ;;  %v7740_v1 = vmov 0 }
 0x17e   : > { %5603 = vmatmul.mubr.msk.bf16.gmra.mrb[64].mxu0 %vm6904_vm13, %v6859_v59  ;;  %v7741_v1 = vsel %vm7067_vm15, 4294967295, %v7740_v1  ;;  %v4774_v59 = vpack.c.bf16 %v2590_v54, %v2589_v9  ;;  %vm7073_vm13 = vmpackc.low %vm5178_vm14, %vm6425_vm1  ;;  %v815_v53 = vand.u32 15, %v783_v11  ;;  %vm5180_vm14 = vcmp.ne.s32.totalorder %v817_v13, 15  ;;  %v1562_v9 = vld [vmem:[#allocation2 + $0x89] sm:$0xff]  ;;  %v2601_v13 = vld [vmem:[#allocation2 + $0x79] sm:$0xff] }
 0x17f   : > { %5622 = vmatprep.mubr.msk.bf16.mxu0 %vm7054_vm11, %v4622_v0  ;;  %v7743_v6 = vsel %vm7073_vm13, 4294967295, %v7742_v6  ;;  %vm7099_vm6 = vmpackc.low %vm5180_vm14, %vm6425_vm1  ;;  %v7748_v0 = vmov 0  ;;  %v825_v54 = vand.u32 15, %v793_v4  ;;  %v801_v4 = vadd.s32 200, %v6674_v51 }
 0x180   : > { %vm5179_vm4 = vcmp.ne.s32.totalorder %v815_v53, 15  ;;  %v7747_v45 = vsel %vm7099_vm6, 4294967295, %v7746_v45  ;;  %v6366_v53 = vld [vmem:[%s7666_s2 + $0x198] sm:$0xff]  }
 0x181   : > { %vm7090_vm8 = vmpackc.low %vm5179_vm4, %vm6425_vm1 }
 0x182   : > { %v7745_v22 = vsel %vm7090_vm8, 4294967295, %v7744_v22 }
 0x184   : > { %5743 = vmatmul.mubr.bf16.gmra.mrb[8].mxu1 %v6806_v10  ;;  %v787_v10 = vadd.s32 88, %v6674_v51 }
 0x185   : > { %5746 = vmatprep.mubr.bf16.mxu1 %v6785_v56  ;;  %v789_v56 = vadd.s32 104, %v6674_v51 }
 0x186   : > { %5623 = vmatmul.mubr.msk.bf16.vlgmr.msra.gmra.mrb[36].mxu0 %vm7067_vm15, %v4774_v59  ;;  %v819_v47 = vand.u32 15, %v787_v10  ;;  %v7171_v10 = vpack.c.bf16 %v2602_v43, %v2601_v13  ;;  %v805_v13 = vadd.s32 232, %v6674_v51 }
 0x187   : > { %5626 = vmatprep.mubr.msk.bf16.mxu0 %vm7073_vm13, %v7078_v3  ;;  %5655 = vmatpush3.bf16.msra.mxu0 %v6561_v36  ;;  %v7096_v36 = vpack.c.bf16 %v2594_v19, %v2593_v25  ;;  %v821_v2 = vand.u32 15, %v789_v56  ;;  %v7754_v19 = vmov 0  ;;  %v829_v25 = vand.u32 15, %v797_v44 }
 0x188   : > { %5656 = vmatprep.subr.bf16.mxu0 %v6568_v37  ;;  %vm5181_vm4 = vcmp.ne.s32.totalorder %v819_v47, 15  ;;  %v6367_v47 = vld [vmem:[%s7666_s2 + $0x1a0] sm:$0xff]   ;;  %v833_v44 = vand.u32 15, %v801_v4 }
 0x189   : > { %vm5182_vm14 = vcmp.ne.s32.totalorder %v821_v2, 15  ;;  %v799_v2 = vadd.s32 184, %v6674_v51 }
 0x18a   : > { %vm7133_vm5 = vmpackc.low %vm5182_vm14, %vm6425_vm1  ;;  %vm5184_vm14 = vcmp.ne.s32.totalorder %v825_v54, 15 }
 0x18b   : > { %5657 = vmatpush3.bf16.msra.mxu0 %v6568_v37  ;;  %v791_v37 = vadd.s32 120, %v6674_v51  ;;  %v7751_v34 = vsel %vm7133_vm5, 4294967295, %v7750_v34 }
 0x18c   : > { %5747 = vmatmul.mubr.bf16.gmra.mrb[12].mxu1 %v6864_v12  ;;  %5658 = vmatprep.subr.bf16.mxu0 %v6575_v38  ;;  %v2598_v12 = vld [vmem:[#allocation2 + $0x61] sm:$0xff] }
 0x18d   : > { %5766 = vmatprep.mubr.msk.bf16.mxu1 %vm7054_vm11, %v4774_v59  ;;  %vm7122_vm11 = vmpackc.low %vm5181_vm4, %vm6425_vm1  ;;  %v823_v11 = vand.u32 15, %v791_v37  ;;  %v1563_v59 = vld [vmem:[#allocation2 + $0x91] sm:$0xff] }
 0x18e   : > { %5627 = vmatmul.mubr.msk.bf16.gmra.mrb[40].mxu0 %vm7090_vm8, %v7096_v36  ;;  %v7749_v0 = vsel %vm7122_vm11, 4294967295, %v7748_v0  ;;  %v7184_v26 = vpack.c.bf16 %v1563_v59, %v1562_v9  ;;  %v6397_v37 = vld [vmem:[%s7666_s2 + $0xf8] sm:$0xff]   ;;  %v6369_v9 = vld [vmem:[%s7666_s2 + $0x1b0] sm:$0xff]   ;;  %v803_v59 = vadd.s32 216, %v6674_v51 }
 0x18f   : > { %5630 = vmatprep.mubr.msk.bf16.mxu0 %vm7099_vm6, %v7106_v29  ;;  %5659 = vmatpush3.bf16.msra.mxu0 %v6575_v38  ;;  %v7130_v38 = vpack.c.bf16 %v2598_v12, %v2597_v30  ;;  %vm5183_vm4 = vcmp.ne.s32.totalorder %v823_v11, 15  ;;  %v2606_v12 = vld [vmem:[#allocation2 + $0xa1] sm:$0xff]  ;;  %v2605_v30 = vld [vmem:[#allocation2 + $0x99] sm:$0xff] }
 0x190   : > { %5660 = vmatprep.subr.bf16.mxu0 %v6582_v39  ;;  %v7211_v54 = vpack.c.bf16 %v2606_v12, %v2605_v30  ;;  %v835_v12 = vand.u32 15, %v803_v59  ;;  %v2614_v30 = vld [vmem:[#allocation2 + $0xe1] sm:$0xff] }
 0x193   : > { %5661 = vmatpush3.bf16.msra.mxu0 %v6582_v39  ;;  %v7142_v39 = vpack.c.bf16 %v1559_v62, %v1558_v8  ;;  %v1567_v8 = vld [vmem:[#allocation2 + $0xb1] sm:$0xff]  ;;  %v6368_v62 = vld [vmem:[%s7666_s2 + $0x1a8] sm:$0xff]  }
 0x194   : > { %5767 = vmatmul.mubr.msk.bf16.vlgmr.msra.gmra.mrb[16].mxu1 %vm7067_vm15, %v7078_v3  ;;  %5662 = vmatprep.subr.bf16.mxu0 %v6589_v40  ;;  %vm7174_vm15 = vmpackc.low %vm5184_vm14, %vm6425_vm1  ;;  %vm5186_vm14 = vcmp.ne.s32.totalorder %v829_v25, 15  ;;  %v2609_v25 = vld [vmem:[#allocation2 + $0xb9] sm:$0xff] }
 0x195   : > { %5799 = vmatpush3.bf16.msra.mxu1 %v7035_v50  ;;  %5770 = vmatprep.mubr.msk.bf16.mxu1 %vm7073_vm13, %v7096_v36  ;;  %v795_v50 = vadd.s32 152, %v6674_v51  ;;  %vm7161_vm13 = vmpackc.low %vm5183_vm4, %vm6425_vm1  ;;  %v7755_v19 = vsel %vm7174_vm15, 4294967295, %v7754_v19 }
 0x196   : > { %5800 = vmatprep.subr.bf16.mxu1 %v6364_v5  ;;  %5631 = vmatmul.mubr.msk.bf16.gmra.mrb[44].mxu0 %vm7122_vm11, %v7130_v38 }
 0x197   : > { %5634 = vmatprep.mubr.msk.bf16.mxu0 %vm7133_vm5, %v7142_v39  ;;  %5663 = vmatpush3.bf16.msra.mxu0 %v6589_v40  ;;  %v7752_v40 = vmov 0  ;;  %v827_v56 = vand.u32 15, %v795_v50  ;;  %v831_v50 = vand.u32 15, %v799_v2 }
 0x198   : > { %5664 = vmatprep.subr.bf16.mxu0 %v6599_v42  ;;  %v7753_v40 = vsel %vm7161_vm13, 4294967295, %v7752_v40  ;;  %v6395_v42 = vld [vmem:[%s7666_s2 + $0xe8] sm:$0xff]  }
 0x199   : > { %5801 = vmatpush3.bf16.msra.mxu1 %v6364_v5  ;;  %vm5185_vm4 = vcmp.ne.s32.totalorder %v827_v56, 15  ;;  %v1566_v5 = vld [vmem:[#allocation2 + $0xa9] sm:$0xff]  ;;  %v1571_v56 = vld [vmem:[#allocation2 + $0xd1] sm:$0xff] }
 0x19a   : > { %5802 = vmatprep.subr.bf16.mxu1 %v6365_v41  ;;  %v7221_v43 = vpack.c.bf16 %v1567_v8, %v1566_v5  ;;  %v837_v5 = vand.u32 15, %v805_v13  ;;  %v6371_v8 = vld [vmem:[%s7666_s2 + $0x1c0] sm:$0xff]  }
 0x19b   : > { %5665 = vmatpush3.bf16.msra.mxu0 %v6395_v42  ;;  %v1570_v42 = vld [vmem:[#allocation2 + $0xc9] sm:$0xff] }
 0x19c   : > { %5771 = vmatmul.mubr.msk.bf16.gmra.mrb[20].mxu1 %vm7090_vm8, %v7106_v29  ;;  %5666 = vmatprep.subr.bf16.mxu0 %v6396_v24  ;;  %vm7214_vm8 = vmpackc.low %vm5186_vm14, %vm6425_vm1  ;;  %vm5188_vm14 = vcmp.ne.s32.totalorder %v833_v44, 15  ;;  %v7255_v4 = vpack.c.bf16 %v1571_v56, %v1570_v42  ;;  %v1575_v44 = vld [vmem:[#allocation2 + $0xf1] sm:$0xff]  ;;  %v2618_v56 = vld [vmem:[#allocation2 + $0x101] sm:$0xff] }
 0x19d   : > { %5774 = vmatprep.mubr.msk.bf16.mxu1 %vm7099_vm6, %v7130_v38  ;;  %5803 = vmatpush3.bf16.msra.mxu1 %v6365_v41  ;;  %vm7204_vm6 = vmpackc.low %vm5185_vm4, %vm6425_vm1  ;;  %vm5187_vm4 = vcmp.ne.s32.totalorder %v831_v50, 15  ;;  %v1574_v50 = vld [vmem:[#allocation2 + $0xe9] sm:$0xff] }
 0x19e   : > { %5635 = vmatmul.mubr.msk.bf16.gmra.mrb[48].mxu0 %vm7161_vm13, %v7171_v10  ;;  %5804 = vmatprep.subr.bf16.mxu1 %v6366_v53  ;;  %v7285_v42 = vpack.c.bf16 %v1575_v44, %v1574_v50  ;;  %v2947_v50 = vld [vmem:[#allocation2 + $0xcf] sm:$0xff] }
 0x19f   : > { %5638 = vmatprep.mubr.msk.bf16.mxu0 %vm7174_vm15, %v7184_v26  ;;  %5667 = vmatpush3.bf16.msra.mxu0 %v6396_v24  ;;  %v6370_v24 = vld [vmem:[%s7666_s2 + $0x1b8] sm:$0xff]  }
 0x1a0   : > { %5668 = vmatprep.subr.bf16.mxu0 %v6397_v37 }
 0x1a1   : > { %5805 = vmatpush3.bf16.msra.mxu1 %v6366_v53  ;;  %v2610_v53 = vld [vmem:[#allocation2 + $0xc1] sm:$0xff] }
 0x1a2   : > { %5806 = vmatprep.subr.bf16.mxu1 %v6367_v47  ;;  %v7245_v2 = vpack.c.bf16 %v2610_v53, %v2609_v25 }
 0x1a3   : > { %5669 = vmatpush3.bf16.msra.mxu0 %v6397_v37 }
 0x1a4   : > { %5775 = vmatmul.mubr.msk.bf16.gmra.mrb[24].mxu1 %vm7122_vm11, %v7142_v39  ;;  %vm7248_vm11 = vmpackc.low %vm5188_vm14, %vm6425_vm1  ;;  %vm5190_vm14 = vcmp.ne.s32.totalorder %v837_v5, 15  ;;  %v2619_v5 = vld [vmem:[#allocation2 + $0x109] sm:$0xff] }
 0x1a5   : > { %5778 = vmatprep.mubr.msk.bf16.mxu1 %vm7133_vm5, %v7171_v10  ;;  %5807 = vmatpush3.bf16.msra.mxu1 %v6367_v47  ;;  %vm7238_vm5 = vmpackc.low %vm5187_vm4, %vm6425_vm1  ;;  %vm5189_vm4 = vcmp.ne.s32.totalorder %v835_v12, 15 }
 0x1a6   : > { %5639 = vmatmul.mubr.msk.bf16.gmra.mrb[52].mxu0 %vm7204_vm6, %v7211_v54  ;;  %5808 = vmatprep.subr.bf16.mxu1 %v6368_v62 }
 0x1a7   : > { %5642 = vmatprep.mubr.msk.bf16.mxu0 %vm7214_vm8, %v7221_v43 }
 0x1a9   : > { %5809 = vmatpush3.bf16.msra.mxu1 %v6368_v62  ;;  %v807_v62 = vadd.s32 248, %v6674_v51 }
 0x1aa   : > { %5810 = vmatprep.subr.bf16.mxu1 %v6369_v9 }
 0x1ab   : > { %v839_v13 = vand.u32 15, %v807_v62  ;;  %v2620_v62 = vld [vmem:[#allocation2 + $0x111] sm:$0xff] }
 0x1ac   : > { %5779 = vmatmul.mubr.msk.bf16.gmra.mrb[28].mxu1 %vm7161_vm13, %v7184_v26  ;;  %vm7278_vm13 = vmpackc.low %vm5190_vm14, %vm6425_vm1 }
 0x1ad   : > { %5782 = vmatprep.mubr.msk.bf16.mxu1 %vm7174_vm15, %v7211_v54  ;;  %5811 = vmatpush3.bf16.msra.mxu1 %v6369_v9  ;;  %v2613_v9 = vld [vmem:[#allocation2 + $0xd9] sm:$0xff]  ;;  %vm7268_vm15 = vmpackc.low %vm5189_vm4, %vm6425_vm1  ;;  %vm5191_vm4 = vcmp.ne.s32.totalorder %v839_v13, 15 }
 0x1ae   : > { %5643 = vmatmul.mubr.msk.bf16.gmra.mrb[56].mxu0 %vm7238_vm5, %v7245_v2  ;;  %5812 = vmatprep.subr.bf16.mxu1 %v6370_v24  ;;  %v7275_v53 = vpack.c.bf16 %v2614_v30, %v2613_v9  ;;  %vm7294_vm14 = vmpackc.low %vm5191_vm4, %vm6425_vm1  ;;  %v7324_v30 = vpack.c.bf16 %v2620_v62, %v2619_v5  ;;  %vm7770_vm1 = vnez %v7729_v49  ;;  %vm7771_vm4 = vnez %v7731_v61  ;;  %v6377_v49 = vld [vmem:[%s7666_s2 + $0x1f0] sm:$0xff]   ;;  %v2941_v61 = vld [vmem:[#allocation2 + $0x9f] sm:$0xff] }
 0x1af   : > { %5646 = vmatprep.mubr.msk.bf16.mxu0 %vm7248_vm11, %v7255_v4  ;;  %v2946_v9 = vld [vmem:[#allocation2 + $0xc7] sm:$0xff] }
 0x1b0   : > { %v4886_v13 = vpack.c.bf16 %v2947_v50, %v2946_v9  ;;  %v2950_v5 = vld [vmem:[#allocation2 + $0xe7] sm:$0xff]  ;;  %v3269_v50 = vld [vmem:[#allocation2 + $0x58] sm:$0xff] }
 0x1b1   : > { %5813 = vmatpush3.bf16.msra.mxu1 %v6370_v24  ;;  %v2617_v24 = vld [vmem:[#allocation2 + $0xf9] sm:$0xff]  ;;  %v3271_v9 = vld [vmem:[#allocation2 + $0x68] sm:$0xff] }
 0x1b2   : > { %5846 = vmatprep.subr.bf16.mxu1 %v6371_v8  ;;  %v7301_v12 = vpack.c.bf16 %v2618_v56, %v2617_v24  ;;  %v2951_v56 = vld [vmem:[#allocation2 + $0xef] sm:$0xff]  ;;  %v4890_v24 = vpack.c.bf16 %v2949_v20, %v2948_v23  ;;  %v3274_v20 = vld [vmem:[#allocation2 + $0x80] sm:$0xff] }
 0x1b3   : > { %v4894_v62 = vpack.c.bf16 %v2951_v56, %v2950_v5  ;;  %v3276_v56 = vld [vmem:[#allocation2 + $0x90] sm:$0xff] }
 0x1b4   : > { %5783 = vmatmul.mubr.msk.bf16.gmra.mrb[0].mxu1 %vm7204_vm6, %v7221_v43 }
 0x1b5   : > { %5786 = vmatprep.mubr.msk.bf16.mxu1 %vm7214_vm8, %v7245_v2 }
 0x1b6   : > { %5647 = vmatmul.mubr.msk.bf16.gmra.mrb[60].mxu0 %vm7268_vm15, %v7275_v53 }
 0x1b7   : > { %5650 = vmatprep.mubr.msk.bf16.mxu0 %vm7278_vm13, %v7285_v42 }
 0x1bc   : > { %5787 = vmatmul.mubr.msk.bf16.gmra.mrb[4].mxu1 %vm7238_vm5, %v7255_v4 }
 0x1bd   : > { %5790 = vmatprep.mubr.msk.bf16.mxu1 %vm7248_vm11, %v7275_v53 }
 0x1be   : > { %5651 = vmatmul.mubr.msk.bf16.gmra.mrb[64].mxu0 %vm7294_vm14, %v7301_v12 }
 0x1bf   : > { %5670 = vmatprep.mubr.msk.bf16.mxu0 %vm6816_vm12, %v6876_v15  ;;  %v6372_v15 = vld [vmem:[%s7666_s2 + $0x1c8] sm:$0xff]  }
 0x1c4   : > { %5791 = vmatmul.mubr.msk.bf16.gmra.mrb[8].mxu1 %vm7268_vm15, %v7285_v42 }
 0x1c5   : > { %5794 = vmatprep.mubr.msk.bf16.mxu1 %vm7278_vm13, %v7301_v12 }
 0x1c6   : > { %5671 = vmatmul.mubr.msk.bf16.vlgmr.msra.gmra.mrb[36].mxu0 %vm6869_vm7, %v6891_v21 }
 0x1c7   : > { %5674 = vmatprep.mubr.msk.bf16.mxu0 %vm6881_vm9, %v6923_v52 }
 0x1cc   : > { %5795 = vmatmul.mubr.msk.bf16.gmra.mrb[12].mxu1 %vm7294_vm14, %v7324_v30 }
 0x1cd   : > { %5814 = vmatprep.mubr.msk.bf16.mxu1 %vm6816_vm12, %v6891_v21  ;;  %v6376_v21 = vld [vmem:[%s7666_s2 + $0x1e8] sm:$0xff]   ;;  %vm7772_vm12 = vnez %v7697_v58 }
 0x1ce   : > { %5675 = vmatmul.mubr.msk.bf16.gmra.mrb[40].mxu0 %vm7770_vm1, %v6934_v16 }
 0x1cf   : > { %5678 = vmatprep.mubr.msk.bf16.mxu0 %vm7771_vm4, %v6958_v35 }
 0x1d4   : > { %5815 = vmatmul.mubr.msk.bf16.vlgmr.msra.gmra.mrb[16].mxu1 %vm6869_vm7, %v6923_v52  ;;  %v2940_v52 = vld [vmem:[#allocation2 + $0x97] sm:$0xff]  ;;  %vm7773_vm7 = vnez %v7699_v7 }
 0x1d5   : > { %5847 = vmatpush3.bf16.msra.mxu1 %v6371_v8  ;;  %5818 = vmatprep.mubr.msk.bf16.mxu1 %vm6881_vm9, %v6934_v16  ;;  %v2943_v16 = vld [vmem:[#allocation2 + $0xaf] sm:$0xff]  ;;  %v2945_v8 = vld [vmem:[#allocation2 + $0xbf] sm:$0xff]  ;;  %vm7775_vm9 = vnez %v7709_v63  ;;  %v2956_v7 = vld [vmem:[#allocation2 + $0x117] sm:$0xff] }
 0x1d6   : > { %5848 = vmatprep.subr.bf16.mxu1 %v6372_v15  ;;  %5679 = vmatmul.mubr.msk.bf16.gmra.mrb[44].mxu0 %vm6953_vm10, %v6969_v48  ;;  %v3266_v63 = vld [vmem:[#allocation2 + $0x40] sm:$0xff] }
 0x1d7   : > { %5682 = vmatprep.mubr.msk.bf16.mxu0 %vm6961_vm3, %v6992_v55 }
 0x1d9   : > { %5849 = vmatpush3.bf16.msra.mxu1 %v6372_v15  ;;  %v2952_v15 = vld [vmem:[#allocation2 + $0xf7] sm:$0xff] }
 0x1da   : > { %5850 = vmatprep.subr.bf16.mxu1 %v6373_v17 }
 0x1dc   : > { %5819 = vmatmul.mubr.msk.bf16.gmra.mrb[20].mxu1 %vm7770_vm1, %v6958_v35  ;;  %v4874_v35 = vpack.c.bf16 %v2941_v61, %v2940_v52  ;;  %v3264_v52 = vld [vmem:[#allocation2 + $0x30] sm:$0xff]  ;;  %v3263_v61 = vld [vmem:[#allocation2 + $0x28] sm:$0xff]  ;;  %vm7779_vm1 = vnez %v7739_v27 }
 0x1dd   : > { %5822 = vmatprep.mubr.msk.bf16.mxu1 %vm7771_vm4, %v6969_v48  ;;  %5851 = vmatpush3.bf16.msra.mxu1 %v6373_v17  ;;  %v2942_v48 = vld [vmem:[#allocation2 + $0xa7] sm:$0xff]  ;;  %v2953_v17 = vld [vmem:[#allocation2 + $0xff] sm:$0xff]  ;;  %vm7780_vm4 = vnez %v7741_v1 }
 0x1de   : > { %5683 = vmatmul.mubr.msk.bf16.gmra.mrb[48].mxu0 %vm6987_vm0, %v6998_v31  ;;  %5852 = vmatprep.subr.bf16.mxu1 %v6374_v14  ;;  %v4898_v58 = vpack.c.bf16 %v2953_v17, %v2952_v15  ;;  %v6384_v15 = vld [vmem:[%s7666_s2 + $0x228] sm:$0xff]  }
 0x1e1   : > { %5853 = vmatpush3.bf16.msra.mxu1 %v6374_v14  ;;  %v2955_v14 = vld [vmem:[#allocation2 + $0x10f] sm:$0xff] }
 0x1e2   : > { %5854 = vmatprep.subr.bf16.mxu1 %v6375_v18 }
 0x1e4   : > { %5823 = vmatmul.mubr.msk.bf16.gmra.mrb[24].mxu1 %vm6953_vm10, %v6992_v55  ;;  %v4878_v55 = vpack.c.bf16 %v2943_v16, %v2942_v48  ;;  %vm7777_vm10 = vnez %v7721_v57  ;;  %v3295_v16 = vpack.c.bf16 %v3264_v52, %v3263_v61  ;;  %v3265_v48 = vld [vmem:[#allocation2 + $0x38] sm:$0xff]  ;;  %v3282_v61 = vld [vmem:[#allocation2 + $0xc0] sm:$0xff] }
 0x1e5   : > { %5826 = vmatprep.mubr.msk.bf16.mxu1 %vm6961_vm3, %v6998_v31  ;;  %5855 = vmatpush3.bf16.msra.mxu1 %v6375_v18  ;;  %v2944_v31 = vld [vmem:[#allocation2 + $0xb7] sm:$0xff]  ;;  %v2954_v18 = vld [vmem:[#allocation2 + $0x107] sm:$0xff]  ;;  %vm7776_vm3 = vnez %v7715_v33 }
 0x1e6   : > { %5856 = vmatprep.subr.bf16.mxu1 %v6376_v21  ;;  %v4882_v44 = vpack.c.bf16 %v2945_v8, %v2944_v31  ;;  %v6380_v33 = vld [vmem:[%s7666_s2 + $0x208] sm:$0xff]   ;;  %v3270_v31 = vld [vmem:[#allocation2 + $0x60] sm:$0xff]  ;;  %v3272_v8 = vld [vmem:[#allocation2 + $0x70] sm:$0xff] }
 0x1e7   : > { %v3299_v23 = vpack.c.bf16 %v3272_v8, %v3271_v9  ;;  %v6386_v52 = vld [vmem:[%s7666_s2 + $0x238] sm:$0xff]  }
 0x1e8   : > { %v3285_v8 = vld [vmem:[#allocation2 + $0xd8] sm:$0xff] }
 0x1e9   : > { %5857 = vmatpush3.bf16.msra.mxu1 %v6376_v21  ;;  %v4902_v21 = vpack.c.bf16 %v2955_v14, %v2954_v18  ;;  %v6385_v14 = vld [vmem:[%s7666_s2 + $0x230] sm:$0xff]  }
 0x1ea   : > { %5858 = vmatprep.subr.bf16.mxu1 %v6377_v49  ;;  %v3280_v18 = vld [vmem:[#allocation2 + $0xb0] sm:$0xff] }
 0x1ec   : > { %5827 = vmatmul.mubr.msk.bf16.gmra.mrb[28].mxu1 %vm6987_vm0, %v4874_v35  ;;  %vm7778_vm0 = vnez %v7727_v28  ;;  %v3268_v35 = vld [vmem:[#allocation2 + $0x50] sm:$0xff] }
 0x1ed   : > { %5830 = vmatprep.mubr.msk.bf16.mxu1 %vm6702_vm2, %v4878_v55  ;;  %5859 = vmatpush3.bf16.msra.mxu1 %v6377_v49  ;;  %vm7774_vm2 = vnez %v7703_v32  ;;  %v2957_v49 = vld [vmem:[#allocation2 + $0x11f] sm:$0xff]  ;;  %v3267_v55 = vld [vmem:[#allocation2 + $0x48] sm:$0xff]  ;;  %v6381_v28 = vld [vmem:[%s7666_s2 + $0x210] sm:$0xff]  }
 0x1ee   : > { %5860 = vmatprep.subr.bf16.mxu1 %v6378_v46  ;;  %v4906_v32 = vpack.c.bf16 %v2957_v49, %v2956_v7  ;;  %v3297_v57 = vpack.c.bf16 %v3268_v35, %v3267_v55  ;;  %v3279_v49 = vld [vmem:[#allocation2 + $0xa8] sm:$0xff]  ;;  %v6387_v55 = vld [vmem:[%s7667_s3] sm:$0xff]  }
 0x1ef   : > { %5942 = vmatprep.subr.bf16.mxu0 %v6387_v55 }
 0x1f0   : > { %5943 = vmatpush3.bf16.msra.mxu0 %v6387_v55 }
 0x1f1   : > { %5861 = vmatpush3.bf16.msra.mxu1 %v6378_v46  ;;  %v3296_v46 = vpack.c.bf16 %v3266_v63, %v3265_v48  ;;  %v3281_v63 = vld [vmem:[#allocation2 + $0xb8] sm:$0xff]  ;;  %v3283_v48 = vld [vmem:[#allocation2 + $0xc8] sm:$0xff] }
 0x1f2   : > { %5894 = vmatprep.subr.bf16.mxu1 %v6379_v60  ;;  %v3304_v35 = vpack.c.bf16 %v3282_v61, %v3281_v63  ;;  %v7542_v61 = vld [vmem:[%s7669_s5] ss:$0 sm:$0xff] }
 0x1f4   : > { %5831 = vmatmul.mubr.msk.bf16.gmra.mrb[0].mxu1 %vm7772_vm12, %v4882_v44  ;;  %v3298_v44 = vpack.c.bf16 %v3270_v31, %v3269_v50  ;;  %v6389_v31 = vld [vmem:[%s7667_s3 + $0x10] sm:$0xff]   ;;  %vm7781_vm12 = vnez %v7743_v6 }
 0x1f5   : > { %5834 = vmatprep.mubr.msk.bf16.mxu1 %vm7773_vm7, %v4886_v13  ;;  %v6382_v13 = vld [vmem:[%s7666_s2 + $0x218] sm:$0xff]   ;;  %vm7782_vm7 = vnez %v7745_v22 }
 0x1fc   : > { %5835 = vmatmul.mubr.msk.bf16.gmra.mrb[4].mxu1 %vm7774_vm2, %v4890_v24  ;;  %v3273_v24 = vld [vmem:[#allocation2 + $0x78] sm:$0xff]  ;;  %vm7783_vm2 = vnez %v7747_v45 }
 0x1fd   : > { %5838 = vmatprep.mubr.msk.bf16.mxu1 %vm7775_vm9, %v4894_v62  ;;  %v3300_v5 = vpack.c.bf16 %v3274_v20, %v3273_v24  ;;  %v3275_v62 = vld [vmem:[#allocation2 + $0x88] sm:$0xff]  ;;  %v6391_v20 = vld [vmem:[%s7667_s3 + $0x20] sm:$0xff]   ;;  %vm7784_vm9 = vnez %v7749_v0 }
 0x1fe   : > { %v3301_v17 = vpack.c.bf16 %v3276_v56, %v3275_v62  ;;  %v3289_v56 = vld [vmem:[#allocation2 + $0xf8] sm:$0xff] }
 0x1ff   : > { %v3598_v0 = vld [vmem:[#allocation2 + $0x119] sm:$0xff] }
 0x204   : > { %5839 = vmatmul.mubr.msk.bf16.gmra.mrb[8].mxu1 %vm7776_vm3, %v4898_v58  ;;  %v3278_v58 = vld [vmem:[#allocation2 + $0xa0] sm:$0xff]  ;;  %vm7785_vm3 = vnez %v7751_v34 }
 0x205   : > { %5842 = vmatprep.mubr.msk.bf16.mxu1 %vm7777_vm10, %v4902_v21  ;;  %v3277_v21 = vld [vmem:[#allocation2 + $0x98] sm:$0xff]  ;;  %vm7786_vm10 = vnez %v7753_v40 }
 0x206   : > { %v3302_v7 = vpack.c.bf16 %v3278_v58, %v3277_v21  ;;  %v6393_v58 = vld [vmem:[%s7667_s3 + $0x30] sm:$0xff]  }
 0x20c   : > { %5843 = vmatmul.mubr.msk.bf16.gmra.mrb[12].mxu1 %vm7778_vm0, %v4906_v32  ;;  %v3303_v32 = vpack.c.bf16 %v3280_v18, %v3279_v49  ;;  %vm7787_vm0 = vnez %v7755_v19 }
 0x20d   : > { %5862 = vmatprep.mubr.bf16.mxu1 %v3295_v16  ;;  %v3284_v16 = vld [vmem:[#allocation2 + $0xd0] sm:$0xff] }
 0x214   : > { %5863 = vmatmul.mubr.bf16.vlgmr.msra.gmra.mrb[16].mxu1 %v3296_v46  ;;  %v3305_v46 = vpack.c.bf16 %v3284_v16, %v3283_v48 }
 0x215   : > { %5895 = vmatpush3.bf16.msra.mxu1 %v6379_v60  ;;  %5866 = vmatprep.mubr.bf16.mxu1 %v3297_v57  ;;  %v6383_v60 = vld [vmem:[%s7666_s2 + $0x220] sm:$0xff]  }
 0x216   : > { %5896 = vmatprep.subr.bf16.mxu1 %v6380_v33  ;;  %v3286_v57 = vld [vmem:[#allocation2 + $0xe0] sm:$0xff] }
 0x217   : > { %v3306_v50 = vpack.c.bf16 %v3286_v57, %v3285_v8 }
 0x219   : > { %5897 = vmatpush3.bf16.msra.mxu1 %v6380_v33  ;;  %v6388_v33 = vld [vmem:[%s7667_s3 + $0x8] sm:$0xff]  }
 0x21a   : > { %5898 = vmatprep.subr.bf16.mxu1 %v6381_v28  ;;  %5944 = vmatprep.subr.bf16.mxu0 %v6388_v33 }
 0x21b   : > { %5945 = vmatpush3.bf16.msra.mxu0 %v6388_v33 }
 0x21c   : > { %5867 = vmatmul.mubr.bf16.gmra.mrb[20].mxu1 %v3298_v44  ;;  %v3287_v44 = vld [vmem:[#allocation2 + $0xe8] sm:$0xff]  ;;  %5946 = vmatprep.subr.bf16.mxu0 %v6389_v31 }
 0x21d   : > { %5870 = vmatprep.mubr.bf16.mxu1 %v3299_v23  ;;  %5899 = vmatpush3.bf16.msra.mxu1 %v6381_v28  ;;  %v3288_v28 = vld [vmem:[#allocation2 + $0xf0] sm:$0xff]  ;;  %v3290_v23 = vld [vmem:[#allocation2 + $0x100] sm:$0xff] }
 0x21e   : > { %5900 = vmatprep.subr.bf16.mxu1 %v6382_v13  ;;  %v3307_v9 = vpack.c.bf16 %v3288_v28, %v3287_v44  ;;  %v3308_v24 = vpack.c.bf16 %v3290_v23, %v3289_v56 }
 0x21f   : > { %5947 = vmatpush3.bf16.msra.mxu0 %v6389_v31 }
 0x221   : > { %5901 = vmatpush3.bf16.msra.mxu1 %v6382_v13  ;;  %v6390_v13 = vld [vmem:[%s7667_s3 + $0x18] sm:$0xff]  }
 0x222   : > { %5902 = vmatprep.subr.bf16.mxu1 %v6383_v60  ;;  %5948 = vmatprep.subr.bf16.mxu0 %v6390_v13 }
 0x223   : > { %5949 = vmatpush3.bf16.msra.mxu0 %v6390_v13 }
 0x224   : > { %5871 = vmatmul.mubr.bf16.gmra.mrb[24].mxu1 %v3300_v5  ;;  %v3291_v5 = vld [vmem:[#allocation2 + $0x108] sm:$0xff]  ;;  %5950 = vmatprep.subr.bf16.mxu0 %v6391_v20 }
 0x225   : > { %5874 = vmatprep.mubr.bf16.mxu1 %v3301_v17  ;;  %5903 = vmatpush3.bf16.msra.mxu1 %v6383_v60  ;;  %v3292_v60 = vld [vmem:[#allocation2 + $0x110] sm:$0xff] }
 0x226   : > { %5904 = vmatprep.subr.bf16.mxu1 %v6384_v15  ;;  %v3309_v62 = vpack.c.bf16 %v3292_v60, %v3291_v5 }
 0x227   : > { %5951 = vmatpush3.bf16.msra.mxu0 %v6391_v20 }
 0x229   : > { %5905 = vmatpush3.bf16.msra.mxu1 %v6384_v15  ;;  %v6398_v15 = vld [vmem:[#allocation2 + $0x8] sm:$0xff] }
 0x22a   : > { %5906 = vmatprep.subr.bf16.mxu1 %v6385_v14  ;;  %v3310_v17 = vpack.c.bf16 %v6398_v15, %v6398_v15 }
 0x22c   : > { %5875 = vmatmul.mubr.bf16.gmra.mrb[28].mxu1 %v3302_v7  ;;  %v6394_v7 = vld [vmem:[%s7667_s3 + $0x38] sm:$0xff]  }
 0x22d   : > { %5878 = vmatprep.mubr.bf16.mxu1 %v3303_v32  ;;  %5907 = vmatpush3.bf16.msra.mxu1 %v6385_v14 }
 0x22e   : > { %5908 = vmatprep.subr.bf16.mxu1 %v6386_v52 }
 0x231   : > { %5909 = vmatpush3.bf16.msra.mxu1 %v6386_v52 }
 0x234   : > { %5879 = vmatmul.mubr.bf16.gmra.mrb[0].mxu1 %v3304_v35 }
 0x235   : > { %5882 = vmatprep.mubr.bf16.mxu1 %v3305_v46 }
 0x23c   : > { %5883 = vmatmul.mubr.bf16.gmra.mrb[4].mxu1 %v3306_v50 }
 0x23d   : > { %5886 = vmatprep.mubr.bf16.mxu1 %v3307_v9 }
 0x244   : > { %5887 = vmatmul.mubr.bf16.gmra.mrb[8].mxu1 %v3308_v24 }
 0x245   : > { %5890 = vmatprep.mubr.bf16.mxu1 %v3309_v62 }
 0x24c   : > { %5891 = vmatmul.mubr.bf16.gmra.mrb[12].mxu1 %v3310_v17 }
 0x24d   : > { %5910 = vmatprep.mubr.msk.bf16.mxu1 %vm7779_vm1, %v7078_v3 }
 0x254   : > { %5911 = vmatmul.mubr.msk.bf16.vlgmr.msra.gmra.mrb[16].mxu1 %vm7780_vm4, %v7096_v36 }
 0x255   : > { %5914 = vmatprep.mubr.msk.bf16.mxu1 %vm7781_vm12, %v7106_v29 }
 0x25c   : > { %5915 = vmatmul.mubr.msk.bf16.gmra.mrb[20].mxu1 %vm7782_vm7, %v7130_v38  ;;  %v3599_v38 = vld [vmem:[#allocation2 + $0x121] sm:$0xff] }
 0x25d   : > { %5918 = vmatprep.mubr.msk.bf16.mxu1 %vm7783_vm2, %v7142_v39  ;;  %v4986_v34 = vpack.c.bf16 %v3599_v38, %v3598_v0 }
 0x264   : > { %5919 = vmatmul.mubr.msk.bf16.gmra.mrb[24].mxu1 %vm7784_vm9, %v7171_v10 }
 0x265   : > { %5922 = vmatprep.mubr.msk.bf16.mxu1 %vm7785_vm3, %v7184_v26 }
 0x26c   : > { %5923 = vmatmul.mubr.msk.bf16.gmra.mrb[28].mxu1 %vm7786_vm10, %v7211_v54 }
 0x26d   : > { %5926 = vmatprep.mubr.msk.bf16.mxu1 %vm7787_vm0, %v7221_v43 }
 0x274   : > { %5927 = vmatmul.mubr.msk.bf16.gmra.mrb[0].mxu1 %vm7204_vm6, %v7245_v2 }
 0x275   : > { %5930 = vmatprep.mubr.msk.bf16.mxu1 %vm7214_vm8, %v7255_v4 }
 0x279   : > { %v7476_v27 = vpop.f32.mrb[52].mxu0 }
 0x27a   : > { %v7478_v1 = vpop.f32.mrb[53].mxu0 }
 0x27b   : > { %v7480_v6 = vpop.f32.mrb[54].mxu0 }
 0x27c   : > { %5931 = vmatmul.mubr.msk.bf16.gmra.mrb[4].mxu1 %vm7238_vm5, %v7275_v53  ;;  %v7485_v3 = vpop.f32.mrb[55].mxu0 }
 0x27d   : > { %5934 = vmatprep.mubr.msk.bf16.mxu1 %vm7248_vm11, %v7285_v42 }
 0x281   : > { %v7490_v22 = vpop.f32.mrb[56].mxu0 }
 0x282   : > { %v7492_v36 = vpop.f32.mrb[57].mxu0 }
 0x283   : > { %v7494_v45 = vpop.f32.mrb[58].mxu0 }
 0x284   : > { %5935 = vmatmul.mubr.msk.bf16.gmra.mrb[8].mxu1 %vm7268_vm15, %v7301_v12  ;;  %v7499_v29 = vpop.f32.mrb[59].mxu0  ;;  %v6392_v12 = vld [vmem:[%s7667_s3 + $0x28] sm:$0xff]  }
 0x285   : > { %5938 = vmatprep.mubr.msk.bf16.mxu1 %vm7278_vm13, %v7324_v30  ;;  %5952 = vmatprep.subr.bf16.mxu0 %v6392_v12 }
 0x286   : > { %5953 = vmatpush3.bf16.msra.mxu0 %v6392_v12 }
 0x287   : > { %5954 = vmatprep.subr.bf16.mxu0 %v6393_v58 }
 0x289   : > { %v7504_v39 = vpop.f32.mrb[60].mxu0 }
 0x28a   : > { %v7506_v40 = vpop.f32.mrb[61].mxu0  ;;  %5955 = vmatpush3.bf16.msra.mxu0 %v6393_v58 }
 0x28b   : > { %v7508_v10 = vpop.f32.mrb[62].mxu0  ;;  %5956 = vmatprep.subr.bf16.mxu0 %v6394_v7 }
 0x28c   : > { %5939 = vmatmul.mubr.msk.bf16.gmra.mrb[12].mxu1 %vm7294_vm14, %v4986_v34  ;;  %v7512_v19 = vpop.f32.mrb[63].mxu0 }
 0x28e   : > { %5957 = vmatpush3.bf16.msra.mxu0 %v6394_v7 }
 0x291   : > { %v7514_v26 = vpop.f32.mrb[64].mxu0 }
 0x292   : > { %v7516_v11 = vpop.f32.mrb[65].mxu0 }
 0x293   : > { %v7518_v54 = vpop.f32.mrb[66].mxu0 }
 0x294   : > { %v7520_v41 = vpop.f32.mrb[67].mxu0 }
 0x299   : > { %v5672_v43 = vpop.f32.mrb[36].mxu0 }
 0x29a   : > { %v2125_v47 = vpop.f32.mrb[37].mxu0 }
 0x29b   : > { %v5673_v2 = vpop.f32.mrb[38].mxu0 }
 0x29c   : > { %v2128_v37 = vpop.f32.mrb[39].mxu0 }
 0x2a1   : > { %v5676_v4 = vpop.f32.mrb[40].mxu0 }
 0x2a2   : > { %v2141_v59 = vpop.f32.mrb[41].mxu0 }
 0x2a3   : > { %v5677_v53 = vpop.f32.mrb[42].mxu0 }
 0x2a4   : > { %v2144_v51 = vpop.f32.mrb[43].mxu0 }
 0x2a9   : > { %v5680_v42 = vpop.f32.mrb[44].mxu0 }
 0x2aa   : > { %v2157_v25 = vpop.f32.mrb[45].mxu0 }
 0x2ab   : > { %v5681_v30 = vpop.f32.mrb[46].mxu0 }
 0x2ac   : > { %v2160_v14 = vpop.f32.mrb[47].mxu0 }
 0x2b1   : > { %v7528_v18 = vpop.f32.mrb[48].mxu0 }
 0x2b2   : > { %v7530_v21 = vpop.f32.mrb[49].mxu0 }
 0x2b3   : > { %v7535_v49 = vpop.f32.mrb[50].mxu0 }
 0x2b4   : > { %v7537_v52 = vpop.f32.mrb[51].mxu0 }
 0x327   : > { %v5912_v32 = vpop.f32.mrb[16].mxu1 }
 0x328   : > { %v6006_v16 = vadd.f32 %v5912_v32, %v5672_v43  ;;  %v3746_v63 = vpop.f32.mrb[17].mxu1 }
 0x329   : > { %v6007_v35 = vadd.f32 %v3746_v63, %v2125_v47  ;;  %v5913_v48 = vpop.f32.mrb[18].mxu1 }
 0x32a   : > { %v3914_v46 = vadd.f32 %v6006_v16, %v7542_v61  ;;  %v6008_v55 = vadd.f32 %v5913_v48, %v5673_v2  ;;  %v3749_v33 = vpop.f32.mrb[19].mxu1 }
 0x32b   : > { %v3912_v57 = vadd.f32 %v6007_v35, %v7542_v61  ;;  %v6009_v28 = vadd.f32 %v3749_v33, %v2128_v37 }
 0x32c   : > { %v3915_v31 = vadd.f32 %v6008_v55, %v7542_v61  ;;  %v3946_v50 = vmax.f32 %v3914_v46, 0.0 }
 0x32d   : > { %v3913_v8 = vadd.f32 %v6009_v28, %v7542_v61  ;;  %v3944_v9 = vmax.f32 %v3912_v57, 0.0 }
 0x32e   : > { %v3947_v44 = vmax.f32 %v3915_v31, 0.0 }
 0x32f   : > { %v3945_v13 = vmax.f32 %v3913_v8, 0.0  ;;  %v5916_v23 = vpop.f32.mrb[20].mxu1 }
 0x330   : > { %v3977_v60 = vpack.c.bf16 %v3947_v44, %v3946_v50  ;;  %v6010_v20 = vadd.f32 %v5916_v23, %v5676_v4  ;;  %v3762_v56 = vpop.f32.mrb[21].mxu1 }
 0x331   : > { %v6011_v24 = vadd.f32 %v3762_v56, %v2141_v59  ;;  %v5917_v5 = vpop.f32.mrb[22].mxu1  ;;  %v3976_v62 = vpack.c.bf16 %v3945_v13, %v3944_v9 }
 0x332   : > { %v3918_v15 = vadd.f32 %v6010_v20, %v7542_v61  ;;  %v6012_v17 = vadd.f32 %v5917_v5, %v5677_v53  ;;  %v3765_v0 = vpop.f32.mrb[23].mxu1 }
 0x333   : > { %v3916_v38 = vadd.f32 %v6011_v24, %v7542_v61  ;;  %v6013_v34 = vadd.f32 %v3765_v0, %v2144_v51  ;;  %5958 = vmatprep.mubr.bf16.mxu0 %v3976_v62 }
 0x334   : > { %v3919_v43 = vadd.f32 %v6012_v17, %v7542_v61  ;;  %5959 = vmatmul.mubr.bf16.vlgmr.msra.gmra.mrb[68].mxu0 %v3977_v60  ;;  %v3950_v2 = vmax.f32 %v3918_v15, 0.0 }
 0x335   : > { %v3917_v47 = vadd.f32 %v6013_v34, %v7542_v61  ;;  %v3948_v4 = vmax.f32 %v3916_v38, 0.0 }
 0x336   : > { %v3951_v37 = vmax.f32 %v3919_v43, 0.0 }
 0x337   : > { %v3949_v12 = vmax.f32 %v3917_v47, 0.0  ;;  %v5920_v59 = vpop.f32.mrb[24].mxu1 }
 0x338   : > { %v6014_v58 = vadd.f32 %v5920_v59, %v5680_v42  ;;  %v3778_v7 = vpop.f32.mrb[25].mxu1  ;;  %v3979_v32 = vpack.c.bf16 %v3951_v37, %v3950_v2 }
 0x339   : > { %v6015_v16 = vadd.f32 %v3778_v7, %v2157_v25  ;;  %v5921_v53 = vpop.f32.mrb[26].mxu1  ;;  %v3978_v63 = vpack.c.bf16 %v3949_v12, %v3948_v4 }
 0x33a   : > { %v3922_v35 = vadd.f32 %v6014_v58, %v7542_v61  ;;  %v6016_v51 = vadd.f32 %v5921_v53, %v5681_v30  ;;  %v3781_v48 = vpop.f32.mrb[27].mxu1 }
 0x33b   : > { %v3920_v46 = vadd.f32 %v6015_v16, %v7542_v61  ;;  %v6017_v55 = vadd.f32 %v3781_v48, %v2160_v14  ;;  %5962 = vmatprep.mubr.bf16.mxu0 %v3978_v63 }
 0x33c   : > { %v3923_v33 = vadd.f32 %v6016_v51, %v7542_v61  ;;  %5963 = vmatmul.mubr.bf16.gmra.mrb[72].mxu0 %v3979_v32  ;;  %v3954_v28 = vmax.f32 %v3922_v35, 0.0 }
 0x33d   : > { %v3921_v57 = vadd.f32 %v6017_v55, %v7542_v61  ;;  %v3952_v31 = vmax.f32 %v3920_v46, 0.0 }
 0x33e   : > { %v3955_v42 = vmax.f32 %v3923_v33, 0.0 }
 0x33f   : > { %v3953_v8 = vmax.f32 %v3921_v57, 0.0  ;;  %v5924_v25 = vpop.f32.mrb[28].mxu1 }
 0x340   : > { %v6018_v50 = vadd.f32 %v5924_v25, %v7528_v18  ;;  %v3794_v44 = vpop.f32.mrb[29].mxu1  ;;  %v3981_v9 = vpack.c.bf16 %v3955_v42, %v3954_v28 }
 0x341   : > { %v6019_v30 = vadd.f32 %v3794_v44, %v7530_v21  ;;  %v5925_v13 = vpop.f32.mrb[30].mxu1  ;;  %v3980_v23 = vpack.c.bf16 %v3953_v8, %v3952_v31 }
 0x342   : > { %v3926_v14 = vadd.f32 %v6018_v50, %v7542_v61  ;;  %v6020_v60 = vadd.f32 %v5925_v13, %v7535_v49  ;;  %v3797_v20 = vpop.f32.mrb[31].mxu1 }
 0x343   : > { %v3924_v56 = vadd.f32 %v6019_v30, %v7542_v61  ;;  %v6021_v24 = vadd.f32 %v3797_v20, %v7537_v52  ;;  %5966 = vmatprep.mubr.bf16.mxu0 %v3980_v23 }
 0x344   : > { %v3927_v5 = vadd.f32 %v6020_v60, %v7542_v61  ;;  %5967 = vmatmul.mubr.bf16.gmra.mrb[76].mxu0 %v3981_v9  ;;  %v3958_v62 = vmax.f32 %v3926_v14, 0.0 }
 0x345   : > { %v3925_v18 = vadd.f32 %v6021_v24, %v7542_v61  ;;  %v3956_v21 = vmax.f32 %v3924_v56, 0.0 }
 0x346   : > { %v3959_v15 = vmax.f32 %v3927_v5, 0.0 }
 0x347   : > { %v3957_v17 = vmax.f32 %v3925_v18, 0.0  ;;  %v5928_v0 = vpop.f32.mrb[0].mxu1 }
 0x348   : > { %v6022_v38 = vadd.f32 %v5928_v0, %v7476_v27  ;;  %v3810_v34 = vpop.f32.mrb[1].mxu1  ;;  %v3983_v49 = vpack.c.bf16 %v3959_v15, %v3958_v62 }
 0x349   : > { %v6023_v43 = vadd.f32 %v3810_v34, %v7478_v1  ;;  %v5929_v47 = vpop.f32.mrb[2].mxu1  ;;  %v3982_v2 = vpack.c.bf16 %v3957_v17, %v3956_v21 }
 0x34a   : > { %v3930_v52 = vadd.f32 %v6022_v38, %v7542_v61  ;;  %v6024_v37 = vadd.f32 %v5929_v47, %v7480_v6  ;;  %v3813_v4 = vpop.f32.mrb[3].mxu1 }
 0x34b   : > { %v3928_v12 = vadd.f32 %v6023_v43, %v7542_v61  ;;  %v6025_v59 = vadd.f32 %v3813_v4, %v7485_v3  ;;  %5970 = vmatprep.mubr.bf16.mxu0 %v3982_v2 }
 0x34c   : > { %v3931_v58 = vadd.f32 %v6024_v37, %v7542_v61  ;;  %5971 = vmatmul.mubr.bf16.gmra.mrb[80].mxu0 %v3983_v49  ;;  %v3962_v7 = vmax.f32 %v3930_v52, 0.0 }
 0x34d   : > { %v3929_v27 = vadd.f32 %v6025_v59, %v7542_v61  ;;  %v3960_v1 = vmax.f32 %v3928_v12, 0.0 }
 0x34e   : > { %v3963_v32 = vmax.f32 %v3931_v58, 0.0 }
 0x34f   : > { %v3961_v16 = vmax.f32 %v3929_v27, 0.0  ;;  %v5932_v53 = vpop.f32.mrb[4].mxu1 }
 0x350   : > { %v6026_v63 = vadd.f32 %v5932_v53, %v7490_v22  ;;  %v3826_v35 = vpop.f32.mrb[5].mxu1  ;;  %v3985_v6 = vpack.c.bf16 %v3963_v32, %v3962_v7 }
 0x351   : > { %v6027_v51 = vadd.f32 %v3826_v35, %v7492_v36  ;;  %v5933_v48 = vpop.f32.mrb[6].mxu1  ;;  %v3984_v46 = vpack.c.bf16 %v3961_v16, %v3960_v1 }
 0x352   : > { %v3934_v3 = vadd.f32 %v6026_v63, %v7542_v61  ;;  %v6028_v55 = vadd.f32 %v5933_v48, %v7494_v45  ;;  %v3829_v33 = vpop.f32.mrb[7].mxu1 }
 0x353   : > { %v3932_v57 = vadd.f32 %v6027_v51, %v7542_v61  ;;  %v6029_v28 = vadd.f32 %v3829_v33, %v7499_v29  ;;  %5974 = vmatprep.mubr.bf16.mxu0 %v3984_v46 }
 0x354   : > { %v3935_v42 = vadd.f32 %v6028_v55, %v7542_v61  ;;  %5975 = vmatmul.mubr.bf16.gmra.mrb[84].mxu0 %v3985_v6  ;;  %v3966_v31 = vmax.f32 %v3934_v3, 0.0 }
 0x355   : > { %v3933_v22 = vadd.f32 %v6029_v28, %v7542_v61  ;;  %v3964_v36 = vmax.f32 %v3932_v57, 0.0 }
 0x356   : > { %v3967_v8 = vmax.f32 %v3935_v42, 0.0 }
 0x357   : > { %v3965_v25 = vmax.f32 %v3933_v22, 0.0  ;;  %v5936_v50 = vpop.f32.mrb[8].mxu1 }
 0x358   : > { %v6030_v44 = vadd.f32 %v5936_v50, %v7504_v39  ;;  %v3842_v9 = vpop.f32.mrb[9].mxu1  ;;  %v3987_v45 = vpack.c.bf16 %v3967_v8, %v3966_v31 }
 0x359   : > { %v6031_v30 = vadd.f32 %v3842_v9, %v7506_v40  ;;  %v5937_v13 = vpop.f32.mrb[10].mxu1  ;;  %v3986_v23 = vpack.c.bf16 %v3965_v25, %v3964_v36 }
 0x35a   : > { %v3938_v29 = vadd.f32 %v6030_v44, %v7542_v61  ;;  %v6032_v14 = vadd.f32 %v5937_v13, %v7508_v10  ;;  %v3845_v60 = vpop.f32.mrb[11].mxu1 }
 0x35b   : > { %v3936_v20 = vadd.f32 %v6031_v30, %v7542_v61  ;;  %v6033_v56 = vadd.f32 %v3845_v60, %v7512_v19  ;;  %5978 = vmatprep.mubr.bf16.mxu0 %v3986_v23 }
 0x35c   : > { %v3939_v24 = vadd.f32 %v6032_v14, %v7542_v61  ;;  %5979 = vmatmul.mubr.bf16.gmra.mrb[88].mxu0 %v3987_v45  ;;  %v3970_v5 = vmax.f32 %v3938_v29, 0.0 }
 0x35d   : > { %v3937_v39 = vadd.f32 %v6033_v56, %v7542_v61  ;;  %v3968_v40 = vmax.f32 %v3936_v20, 0.0 }
 0x35e   : > { %v3971_v18 = vmax.f32 %v3939_v24, 0.0 }
 0x35f   : > { %v3969_v62 = vmax.f32 %v3937_v39, 0.0  ;;  %v5940_v15 = vpop.f32.mrb[12].mxu1 }
 0x360   : > { %v6034_v21 = vadd.f32 %v5940_v15, %v7514_v26  ;;  %v3858_v17 = vpop.f32.mrb[13].mxu1  ;;  %v3989_v10 = vpack.c.bf16 %v3971_v18, %v3970_v5 }
 0x361   : > { %v6035_v0 = vadd.f32 %v3858_v17, %v7516_v11  ;;  %v5941_v38 = vpop.f32.mrb[14].mxu1  ;;  %v3988_v34 = vpack.c.bf16 %v3969_v62, %v3968_v40 }
 0x362   : > { %v3942_v19 = vadd.f32 %v6034_v21, %v7542_v61  ;;  %v6036_v49 = vadd.f32 %v5941_v38, %v7518_v54  ;;  %v3861_v43 = vpop.f32.mrb[15].mxu1  ;;  %v7599_v54 = vld [vmem:[%s7670_s6] ss:$0 sm:$0xff] }
 0x363   : > { %v3940_v47 = vadd.f32 %v6035_v0, %v7542_v61  ;;  %v6037_v2 = vadd.f32 %v3861_v43, %v7520_v41  ;;  %5982 = vmatprep.mubr.bf16.mxu0 %v3988_v34 }
 0x364   : > { %v3943_v52 = vadd.f32 %v6036_v49, %v7542_v61  ;;  %5983 = vmatmul.mubr.bf16.gmra.mrb[92].mxu0 %v3989_v10  ;;  %v3974_v37 = vmax.f32 %v3942_v19, 0.0 }
 0x365   : > { %v3941_v26 = vadd.f32 %v6037_v2, %v7542_v61  ;;  %v3972_v4 = vmax.f32 %v3940_v47, 0.0 }
 0x366   : > { %v3975_v11 = vmax.f32 %v3943_v52, 0.0 }
 0x367   : > { %v3973_v12 = vmax.f32 %v3941_v26, 0.0 }
 0x368   : > { %v3991_v59 = vpack.c.bf16 %v3975_v11, %v3974_v37 }
 0x369   : > { %v3990_v58 = vpack.c.bf16 %v3973_v12, %v3972_v4 }
 0x36b   : > { %5986 = vmatprep.mubr.bf16.mxu0 %v3990_v58 }
 0x36c   : > { %5987 = vmatmul.mubr.bf16.gmra.mrb[96].mxu0 %v3991_v59 }
 0x407   : > { %v5960_v41 = vpop.f32.mrb[68].mxu0 }
 0x408   : > { %v4106_v27 = vadd.f32 %v5960_v41, %v7599_v54  ;;  %v4097_v7 = vpop.f32.mrb[69].mxu0 }
 0x409   : > { %v4098_v32 = vadd.f32 %v7599_v54, %v4097_v7  ;;  %v5961_v61 = vpop.f32.mrb[70].mxu0 }
 0x40a   : > { %v4109_v1 = vadd.f32 %v5961_v61, %v7599_v54  ;;  %v4100_v16 = vpop.f32.mrb[71].mxu0  ;;  %v4226_v63 = vmax.f32 %v4106_v27, 0.0 }
 0x40b   : > { %v4101_v53 = vadd.f32 %v7599_v54, %v4100_v16  ;;  %v4224_v6 = vmax.f32 %v4098_v32, 0.0 }
 0x40c   : > { %v4227_v35 = vmax.f32 %v4109_v1, 0.0 }
 0x40d   : > { %v4225_v51 = vmax.f32 %v4101_v53, 0.0 }
 0x40e   : > { %v5073_v48 = vpack.c.bf16 %v4227_v35, %v4226_v63 }
 0x40f   : > { %v5068_v46 = vpack.c.bf16 %v4225_v51, %v4224_v6  ;;  %v5964_v3 = vpop.f32.mrb[72].mxu0 }
 0x410   : > { %5145 = vst [vmem:[%s7609_s10 + $0x8] sm:$0xff] %v5073_v48   ;;  %v4122_v55 = vadd.f32 %v5964_v3, %v7599_v54  ;;  %v4113_v33 = vpop.f32.mrb[73].mxu0 }
 0x411   : > { %5069 = vst [vmem:[%s7609_s10] sm:$0xff] %v5068_v46   ;;  %v4114_v57 = vadd.f32 %v7599_v54, %v4113_v33  ;;  %v5965_v28 = vpop.f32.mrb[74].mxu0 }
 0x412   : > { %v4125_v42 = vadd.f32 %v5965_v28, %v7599_v54  ;;  %v4116_v22 = vpop.f32.mrb[75].mxu0  ;;  %v4230_v8 = vmax.f32 %v4122_v55, 0.0 }
 0x413   : > { %v4117_v31 = vadd.f32 %v7599_v54, %v4116_v22  ;;  %v4228_v25 = vmax.f32 %v4114_v57, 0.0 }
 0x414   : > { %v4231_v36 = vmax.f32 %v4125_v42, 0.0 }
 0x415   : > { %v4229_v50 = vmax.f32 %v4117_v31, 0.0 }
 0x416   : > { %v5083_v44 = vpack.c.bf16 %v4231_v36, %v4230_v8 }
 0x417   : > { %v5078_v9 = vpack.c.bf16 %v4229_v50, %v4228_v25  ;;  %v5968_v45 = vpop.f32.mrb[76].mxu0 }
 0x418   : > { %5147 = vst [vmem:[%s7609_s10 + $0x18] sm:$0xff] %v5083_v44   ;;  %v4138_v30 = vadd.f32 %v5968_v45, %v7599_v54  ;;  %v4129_v13 = vpop.f32.mrb[77].mxu0 }
 0x419   : > { %5146 = vst [vmem:[%s7609_s10 + $0x10] sm:$0xff] %v5078_v9   ;;  %v4130_v23 = vadd.f32 %v7599_v54, %v4129_v13  ;;  %v5969_v29 = vpop.f32.mrb[78].mxu0 }
 0x41a   : > { %v4141_v14 = vadd.f32 %v5969_v29, %v7599_v54  ;;  %v4132_v60 = vpop.f32.mrb[79].mxu0  ;;  %v4234_v56 = vmax.f32 %v4138_v30, 0.0 }
 0x41b   : > { %v4133_v20 = vadd.f32 %v7599_v54, %v4132_v60  ;;  %v4232_v39 = vmax.f32 %v4130_v23, 0.0 }
 0x41c   : > { %v4235_v24 = vmax.f32 %v4141_v14, 0.0 }
 0x41d   : > { %v4233_v5 = vmax.f32 %v4133_v20, 0.0 }
 0x41e   : > { %v5093_v18 = vpack.c.bf16 %v4235_v24, %v4234_v56 }
 0x41f   : > { %v5088_v40 = vpack.c.bf16 %v4233_v5, %v4232_v39  ;;  %v5972_v62 = vpop.f32.mrb[80].mxu0 }
 0x420   : > { %5149 = vst [vmem:[%s7609_s10 + $0x28] sm:$0xff] %v5093_v18   ;;  %v4154_v15 = vadd.f32 %v5972_v62, %v7599_v54  ;;  %v4145_v21 = vpop.f32.mrb[81].mxu0 }
 0x421   : > { %5148 = vst [vmem:[%s7609_s10 + $0x20] sm:$0xff] %v5088_v40   ;;  %v4146_v17 = vadd.f32 %v7599_v54, %v4145_v21  ;;  %v5973_v10 = vpop.f32.mrb[82].mxu0 }
 0x422   : > { %v4157_v0 = vadd.f32 %v5973_v10, %v7599_v54  ;;  %v4148_v38 = vpop.f32.mrb[83].mxu0  ;;  %v4238_v19 = vmax.f32 %v4154_v15, 0.0 }
 0x423   : > { %v4149_v34 = vadd.f32 %v7599_v54, %v4148_v38  ;;  %v4236_v43 = vmax.f32 %v4146_v17, 0.0 }
 0x424   : > { %v4239_v49 = vmax.f32 %v4157_v0, 0.0 }
 0x425   : > { %v4237_v47 = vmax.f32 %v4149_v34, 0.0 }
 0x426   : > { %v5103_v2 = vpack.c.bf16 %v4239_v49, %v4238_v19 }
 0x427   : > { %v5098_v52 = vpack.c.bf16 %v4237_v47, %v4236_v43  ;;  %v5976_v26 = vpop.f32.mrb[84].mxu0 }
 0x428   : > { %5151 = vst [vmem:[%s7609_s10 + $0x38] sm:$0xff] %v5103_v2   ;;  %v4170_v37 = vadd.f32 %v5976_v26, %v7599_v54  ;;  %v4161_v11 = vpop.f32.mrb[85].mxu0 }
 0x429   : > { %5150 = vst [vmem:[%s7609_s10 + $0x30] sm:$0xff] %v5098_v52   ;;  %v4162_v4 = vadd.f32 %v7599_v54, %v4161_v11  ;;  %v5977_v12 = vpop.f32.mrb[86].mxu0 }
 0x42a   : > { %v4173_v59 = vadd.f32 %v5977_v12, %v7599_v54  ;;  %v4164_v58 = vpop.f32.mrb[87].mxu0  ;;  %v4242_v27 = vmax.f32 %v4170_v37, 0.0 }
 0x42b   : > { %v4165_v41 = vadd.f32 %v7599_v54, %v4164_v58  ;;  %v4240_v32 = vmax.f32 %v4162_v4, 0.0 }
 0x42c   : > { %v4243_v7 = vmax.f32 %v4173_v59, 0.0 }
 0x42d   : > { %v4241_v61 = vmax.f32 %v4165_v41, 0.0 }
 0x42e   : > { %v5113_v1 = vpack.c.bf16 %v4243_v7, %v4242_v27 }
 0x42f   : > { %v5108_v16 = vpack.c.bf16 %v4241_v61, %v4240_v32  ;;  %v5980_v53 = vpop.f32.mrb[88].mxu0 }
 0x430   : > { %5153 = vst [vmem:[%s7609_s10 + $0x48] sm:$0xff] %v5113_v1   ;;  %v4186_v63 = vadd.f32 %v5980_v53, %v7599_v54  ;;  %v4177_v35 = vpop.f32.mrb[89].mxu0 }
 0x431   : > { %5152 = vst [vmem:[%s7609_s10 + $0x40] sm:$0xff] %v5108_v16   ;;  %v4178_v6 = vadd.f32 %v7599_v54, %v4177_v35  ;;  %v5981_v51 = vpop.f32.mrb[90].mxu0 }
 0x432   : > { %v4189_v48 = vadd.f32 %v5981_v51, %v7599_v54  ;;  %v4180_v46 = vpop.f32.mrb[91].mxu0  ;;  %v4246_v55 = vmax.f32 %v4186_v63, 0.0 }
 0x433   : > { %v4181_v3 = vadd.f32 %v7599_v54, %v4180_v46  ;;  %v4244_v57 = vmax.f32 %v4178_v6, 0.0 }
 0x434   : > { %v4247_v33 = vmax.f32 %v4189_v48, 0.0 }
 0x435   : > { %v4245_v28 = vmax.f32 %v4181_v3, 0.0 }
 0x436   : > { %v5123_v42 = vpack.c.bf16 %v4247_v33, %v4246_v55 }
 0x437   : > { %v5118_v22 = vpack.c.bf16 %v4245_v28, %v4244_v57  ;;  %v5984_v31 = vpop.f32.mrb[92].mxu0 }
 0x438   : > { %5155 = vst [vmem:[%s7609_s10 + $0x58] sm:$0xff] %v5123_v42   ;;  %v4202_v8 = vadd.f32 %v5984_v31, %v7599_v54  ;;  %v4193_v36 = vpop.f32.mrb[93].mxu0 }
 0x439   : > { %5154 = vst [vmem:[%s7609_s10 + $0x50] sm:$0xff] %v5118_v22   ;;  %v4194_v25 = vadd.f32 %v7599_v54, %v4193_v36  ;;  %v5985_v50 = vpop.f32.mrb[94].mxu0 }
 0x43a   : > { %v4205_v44 = vadd.f32 %v5985_v50, %v7599_v54  ;;  %v4196_v9 = vpop.f32.mrb[95].mxu0  ;;  %v4250_v30 = vmax.f32 %v4202_v8, 0.0 }
 0x43b   : > { %v4197_v45 = vadd.f32 %v7599_v54, %v4196_v9  ;;  %v4248_v23 = vmax.f32 %v4194_v25, 0.0 }
 0x43c   : > { %v4251_v13 = vmax.f32 %v4205_v44, 0.0 }
 0x43d   : > { %v4249_v29 = vmax.f32 %v4197_v45, 0.0 }
 0x43e   : > { %v5133_v14 = vpack.c.bf16 %v4251_v13, %v4250_v30 }
 0x43f   : > { %v5128_v60 = vpack.c.bf16 %v4249_v29, %v4248_v23  ;;  %v5988_v20 = vpop.f32.mrb[96].mxu0 }
 0x440   : > { %5157 = vst [vmem:[%s7609_s10 + $0x68] sm:$0xff] %v5133_v14   ;;  %v4218_v56 = vadd.f32 %v5988_v20, %v7599_v54  ;;  %v4209_v24 = vpop.f32.mrb[97].mxu0 }
 0x441   : > { %5156 = vst [vmem:[%s7609_s10 + $0x60] sm:$0xff] %v5128_v60   ;;  %v4210_v39 = vadd.f32 %v7599_v54, %v4209_v24  ;;  %v5989_v5 = vpop.f32.mrb[98].mxu0 }
 0x442   : > { %v4221_v18 = vadd.f32 %v5989_v5, %v7599_v54  ;;  %v4212_v40 = vpop.f32.mrb[99].mxu0  ;;  %v4254_v15 = vmax.f32 %v4218_v56, 0.0 }
 0x443   : > { %v4213_v62 = vadd.f32 %v7599_v54, %v4212_v40  ;;  %v4252_v17 = vmax.f32 %v4210_v39, 0.0 }
 0x444   : > { %v4255_v21 = vmax.f32 %v4221_v18, 0.0 }
 0x445   : > { %v4253_v10 = vmax.f32 %v4213_v62, 0.0 }
 0x446   : > { %v5143_v0 = vpack.c.bf16 %v4255_v21, %v4254_v15 }
 0x447   : > { %v5138_v38 = vpack.c.bf16 %v4253_v10, %v4252_v17 }
 0x448   : > { %5159 = vst [vmem:[%s7609_s10 + $0x78] sm:$0xff] %v5143_v0  }
 0x449   : > { %5158 = vst [vmem:[%s7609_s10 + $0x70] sm:$0xff] %v5138_v38  }
 0x44a PF: > { %s17_s26 = sadd.s32 1, %s6421_s26   ;;  %s7788_s24 = smov %s6417_s25 }
 0x44b   : > { %p14_p5 = scmp.ge.s32.totalorder %s17_s26, 4   ;;  %s7789_s25 = smov %s7791_s27 }
 0x44d   :  { %16 = sbr.rel (!%p14_p5) target bundleno = 2 (0x2), region = 82 }

</bundles_post_ra>
